<compile_context>
chip_gen: v5e
topology: v5e:2x2
jax: 0.10.0
libtpu: 0.0.40
codegen_flags: <defaults>
</compile_context>

<pallas_src>
import functools

import jax
import jax.numpy as jnp
from jax.experimental import pallas as pl
from jax.experimental.pallas import tpu as pltpu


NEG_INF = float("-inf")


def _attn_kernel(q_ref, k_ref, v_ref, o_ref, m_sc, l_sc, acc_sc,
                 *, scale, lk_real, tk):
    ki = pl.program_id(2)
    nk = pl.num_programs(2)

    @pl.when(ki == 0)
    def _init():
        m_sc[...] = jnp.full_like(m_sc, NEG_INF)
        l_sc[...] = jnp.zeros_like(l_sc)
        acc_sc[...] = jnp.zeros_like(acc_sc)

    q = q_ref[0]          # (tq, d)
    k = k_ref[0]          # (tk, d)

    # scores: (tq, tk), f32 accumulation on the MXU.
    s = jax.lax.dot_general(q, k, (((1,), (1,)), ((), ())),
                            preferred_element_type=jnp.float32)
    if scale is not None:          # matches `if scale:` in the PyTorch forward
        s = s * scale

    # Mask padded key columns (emitted only when the key length is not
    # tile-aligned), so the softmax normalization is over real keys only.
    if lk_real % tk != 0:
        col = ki * tk + jax.lax.broadcasted_iota(jnp.int32, s.shape, 1)
        s = jnp.where(col < lk_real, s, NEG_INF)

    m_prev = m_sc[...]
    m_new = jnp.maximum(m_prev, jnp.max(s, axis=-1, keepdims=True))
    alpha = jnp.exp(m_prev - m_new)
    p = jnp.exp(s - m_new)

    l_sc[...] = alpha * l_sc[...] + jnp.sum(p, axis=-1, keepdims=True)
    acc_sc[...] = alpha * acc_sc[...] + jnp.dot(
        p.astype(v_ref.dtype), v_ref[0], preferred_element_type=jnp.float32)
    m_sc[...] = m_new

    @pl.when(ki == nk - 1)
    def _finalize():
        o_ref[0] = (acc_sc[...] / l_sc[...]).astype(o_ref.dtype)


def _round_up(x, m):
    return ((x + m - 1) // m) * m


def scaled_dot_product_attention(q, k, v, scale=None, *,
                                 block_q=256, block_k=256):
    """Q: (B, Lq, D), K: (B, Lk, D), V: (B, Lk, Dv) -> context (B, Lq, Dv)."""
    B, Lq, D = q.shape
    Bk, Lk, Dk = k.shape
    Bv, Lv, Dv = v.shape
    assert B == Bk == Bv and D == Dk and Lk == Lv

    # Large tiles (amortize ~0.35us/step pipeline overhead), clamped to the
    # 8-aligned sequence lengths so small inputs still compile.
    tq = min(block_q, _round_up(Lq, 8))
    tk = min(block_k, _round_up(Lk, 8))

    Lq_pad = _round_up(Lq, tq)
    Lk_pad = _round_up(Lk, tk)

    if Lq_pad != Lq:
        q = jnp.pad(q, ((0, 0), (0, Lq_pad - Lq), (0, 0)))
    if Lk_pad != Lk:
        k = jnp.pad(k, ((0, 0), (0, Lk_pad - Lk), (0, 0)))
        v = jnp.pad(v, ((0, 0), (0, Lk_pad - Lk), (0, 0)))

    grid = (B, Lq_pad // tq, Lk_pad // tk)
    kernel = functools.partial(_attn_kernel, scale=scale, lk_real=Lk, tk=tk)

    itemsize = jnp.dtype(q.dtype).itemsize
    cost = pl.CostEstimate(
        flops=2 * B * Lq_pad * Lk_pad * (D + Dv),
        transcendentals=B * Lq_pad * Lk_pad,
        bytes_accessed=(q.size + k.size + v.size + B * Lq_pad * Dv) * itemsize,
    )

    out = pl.pallas_call(
        kernel,
        out_shape=jax.ShapeDtypeStruct((B, Lq_pad, Dv), q.dtype),
        grid_spec=pltpu.PrefetchScalarGridSpec(
            num_scalar_prefetch=0,
            grid=grid,
            in_specs=[
                pl.BlockSpec((1, tq, D), lambda b, qi, ki: (b, qi, 0)),   # Q
                pl.BlockSpec((1, tk, D), lambda b, qi, ki: (b, ki, 0)),   # K
                pl.BlockSpec((1, tk, Dv), lambda b, qi, ki: (b, ki, 0)),  # V
            ],
            out_specs=pl.BlockSpec((1, tq, Dv), lambda b, qi, ki: (b, qi, 0)),
            scratch_shapes=[
                pltpu.VMEM((tq, 1), jnp.float32),   # running max m
                pltpu.VMEM((tq, 1), jnp.float32),   # running denom l
                pltpu.VMEM((tq, Dv), jnp.float32),  # output accumulator
            ],
        ),
        compiler_params=pltpu.CompilerParams(
            dimension_semantics=("parallel", "parallel", "arbitrary")),
        cost_estimate=cost,
    )(q, k, v)

    if Lq_pad != Lq:
        out = out[:, :Lq, :]
    return out


def reference_attention(q, k, v, scale=None):
    """Plain-JAX mirror of the PyTorch forward (returns only context)."""
    attn = jnp.einsum("bqd,bkd->bqk", q, k)
    if scale:
        attn = attn * scale
    attn = jax.nn.softmax(attn, axis=-1)
    return jnp.einsum("bqk,bkd->bqd", attn, v)


if __name__ == "__main__":
    key = jax.random.PRNGKey(0)

    # --- Test 1: lane-dense, tile-aligned shapes ---------------------------
    B, L, Dm = 2, 128, 128
    kq, kk, kv, k2 = jax.random.split(key, 4)
    Q = jax.random.normal(kq, (B, L, Dm), dtype=jnp.float32)
    K = jax.random.normal(kk, (B, L, Dm), dtype=jnp.float32)
    V = jax.random.normal(kv, (B, L, Dm), dtype=jnp.float32)
    scale = 1.0 / float(Dm) ** 0.5

    out = scaled_dot_product_attention(Q, K, V, scale)
    out = jax.block_until_ready(out)
    ref = reference_attention(Q, K, V, scale)
    assert out.shape == (B, L, Dm)
    assert jnp.allclose(out, ref, atol=2e-5, rtol=2e-5), "mismatch (aligned)"

    # --- Test 2: non-aligned lengths (exercises masking path), scale=None --
    B2, Lq2, Lk2, D2 = 2, 40, 36, 32
    kq2, kk2, kv2 = jax.random.split(k2, 3)
    Q2 = jax.random.normal(kq2, (B2, Lq2, D2), dtype=jnp.float32)
    K2 = jax.random.normal(kk2, (B2, Lk2, D2), dtype=jnp.float32)
    V2 = jax.random.normal(kv2, (B2, Lk2, D2), dtype=jnp.float32)

    out2 = scaled_dot_product_attention(Q2, K2, V2, None)
    out2 = jax.block_until_ready(out2)
    ref2 = reference_attention(Q2, K2, V2, None)
    assert out2.shape == (B2, Lq2, D2)
    assert jnp.allclose(out2, ref2, atol=2e-5, rtol=2e-5), "mismatch (masked)"

    print("KERNEL_OK")
</pallas_src>

<mosaic_0001>
module attributes {stable_mosaic.version = 11 : i64} {
  func.func @_attn_kernel(%arg0: i32, %arg1: i32, %arg2: i32, %arg3: memref<1x128x128xf32, #tpu.memory_space<vmem>>, %arg4: memref<1x128x128xf32, #tpu.memory_space<vmem>>, %arg5: memref<1x128x128xf32, #tpu.memory_space<vmem>>, %arg6: memref<1x128x128xf32, #tpu.memory_space<vmem>>, %arg7: memref<128x1xf32, #tpu.memory_space<vmem>>, %arg8: memref<128x1xf32, #tpu.memory_space<vmem>>, %arg9: memref<128x128xf32, #tpu.memory_space<vmem>>) attributes {dimension_semantics = [#tpu.dimension_semantics<parallel>, #tpu.dimension_semantics<parallel>, #tpu.dimension_semantics<arbitrary>], iteration_bounds = array<i64: 2, 1, 1>, scalar_prefetch = 0 : i64, scratch_operands = 3 : i64, tpu.core_type = #tpu.core_type<tc>, window_params = [{transform_indices = @transform_0, window_bounds = array<i64: 1, 128, 128>}, {transform_indices = @transform_1, window_bounds = array<i64: 1, 128, 128>}, {transform_indices = @transform_2, window_bounds = array<i64: 1, 128, 128>}, {transform_indices = @transform_3, window_bounds = array<i64: 1, 128, 128>}]} {
    %c0_i32 = arith.constant 0 : i32
    %0 = arith.cmpi eq, %arg2, %c0_i32 : i32
    %1 = arith.extui %0 : i1 to i32
    %c0_i32_0 = arith.constant 0 : i32
    %2 = arith.cmpi ne, %1, %c0_i32_0 : i32
    scf.if %2 {
      %cst_27 = arith.constant 0xFF800000 : f32
      %37 = vector.broadcast %cst_27 : f32 to vector<128x1xf32>
      %c0_28 = arith.constant 0 : index
      %c0_29 = arith.constant 0 : index
      %38 = vector.load %arg7[%c0_28, %c0_29] : memref<128x1xf32, #tpu.memory_space<vmem>>, vector<128x1xf32>
      tpu.vector_store %arg7[%c0_28, %c0_29], %37 {strides = array<i32>} : memref<128x1xf32, #tpu.memory_space<vmem>>, vector<128x1xf32>,
      %cst_30 = arith.constant 0.000000e+00 : f32
      %39 = vector.broadcast %cst_30 : f32 to vector<128x1xf32>
      %c0_31 = arith.constant 0 : index
      %c0_32 = arith.constant 0 : index
      %40 = vector.load %arg8[%c0_31, %c0_32] : memref<128x1xf32, #tpu.memory_space<vmem>>, vector<128x1xf32>
      tpu.vector_store %arg8[%c0_31, %c0_32], %39 {strides = array<i32>} : memref<128x1xf32, #tpu.memory_space<vmem>>, vector<128x1xf32>,
      %cst_33 = arith.constant 0.000000e+00 : f32
      %41 = vector.broadcast %cst_33 : f32 to vector<128x128xf32>
      %c0_34 = arith.constant 0 : index
      %c0_35 = arith.constant 0 : index
      %42 = vector.load %arg9[%c0_34, %c0_35] : memref<128x128xf32, #tpu.memory_space<vmem>>, vector<128x128xf32>
      tpu.vector_store %arg9[%c0_34, %c0_35], %41 {strides = array<i32>} : memref<128x128xf32, #tpu.memory_space<vmem>>, vector<128x128xf32>,
    } else {
    }
    %c0 = arith.constant 0 : index
    %c0_1 = arith.constant 0 : index
    %c0_2 = arith.constant 0 : index
    %3 = vector.load %arg3[%c0, %c0_1, %c0_2] : memref<1x128x128xf32, #tpu.memory_space<vmem>>, vector<1x128x128xf32>
    %4 = vector.shape_cast %3 : vector<1x128x128xf32> to vector<128x128xf32>
    %c0_3 = arith.constant 0 : index
    %c0_4 = arith.constant 0 : index
    %c0_5 = arith.constant 0 : index
    %5 = vector.load %arg4[%c0_3, %c0_4, %c0_5] : memref<1x128x128xf32, #tpu.memory_space<vmem>>, vector<1x128x128xf32>
    %6 = vector.shape_cast %5 : vector<1x128x128xf32> to vector<128x128xf32>
    %cst = arith.constant dense<0.000000e+00> : vector<128x128xf32>
    %7 = tpu.matmul %4, %6, %cst {dimension_numbers = #tpu.dot_dimension_numbers<[1], [1], [0], [0], [0, 0, 1, 0], [], []>} : vector<128x128xf32>, vector<128x128xf32>, vector<128x128xf32> -> vector<128x128xf32>
    %cst_6 = arith.constant 0.0883883461 : f32
    %8 = vector.broadcast %cst_6 : f32 to vector<128x128xf32>
    %9 = arith.mulf %7, %8 : vector<128x128xf32>
    %c0_7 = arith.constant 0 : index
    %c0_8 = arith.constant 0 : index
    %10 = vector.load %arg7[%c0_7, %c0_8] : memref<128x1xf32, #tpu.memory_space<vmem>>, vector<128x1xf32>
    %cst_9 = arith.constant dense<0xFF800000> : vector<128xf32>
    %11 = vector.multi_reduction <maximumf>, %9, %cst_9 [1] : vector<128x128xf32> to vector<128xf32>
    %12 = vector.shape_cast %11 : vector<128xf32> to vector<128x1xf32>
    %13 = arith.maximumf %10, %12 : vector<128x1xf32>
    %14 = arith.subf %10, %13 : vector<128x1xf32>
    %15 = math.exp %14 : vector<128x1xf32>
    %16 = vector.broadcast %13 : vector<128x1xf32> to vector<128x128xf32>
    %17 = arith.subf %9, %16 : vector<128x128xf32>
    %18 = math.exp %17 : vector<128x128xf32>
    %c0_10 = arith.constant 0 : index
    %c0_11 = arith.constant 0 : index
    %19 = vector.load %arg8[%c0_10, %c0_11] : memref<128x1xf32, #tpu.memory_space<vmem>>, vector<128x1xf32>
    %20 = arith.mulf %15, %19 : vector<128x1xf32>
    %cst_12 = arith.constant dense<0.000000e+00> : vector<128xf32>
    %21 = vector.multi_reduction <add>, %18, %cst_12 [1] : vector<128x128xf32> to vector<128xf32>
    %22 = vector.shape_cast %21 : vector<128xf32> to vector<128x1xf32>
    %23 = arith.addf %20, %22 : vector<128x1xf32>
    %c0_13 = arith.constant 0 : index
    %c0_14 = arith.constant 0 : index
    %24 = vector.load %arg8[%c0_13, %c0_14] : memref<128x1xf32, #tpu.memory_space<vmem>>, vector<128x1xf32>
    tpu.vector_store %arg8[%c0_13, %c0_14], %23 {strides = array<i32>} : memref<128x1xf32, #tpu.memory_space<vmem>>, vector<128x1xf32>,
    %c0_15 = arith.constant 0 : index
    %c0_16 = arith.constant 0 : index
    %25 = vector.load %arg9[%c0_15, %c0_16] : memref<128x128xf32, #tpu.memory_space<vmem>>, vector<128x128xf32>
    %26 = vector.broadcast %15 : vector<128x1xf32> to vector<128x128xf32>
    %27 = arith.mulf %26, %25 : vector<128x128xf32>
    %c0_17 = arith.constant 0 : index
    %c0_18 = arith.constant 0 : index
    %c0_19 = arith.constant 0 : index
    %28 = vector.load %arg5[%c0_17, %c0_18, %c0_19] : memref<1x128x128xf32, #tpu.memory_space<vmem>>, vector<1x128x128xf32>
    %29 = vector.shape_cast %28 : vector<1x128x128xf32> to vector<128x128xf32>
    %cst_20 = arith.constant dense<0.000000e+00> : vector<128x128xf32>
    %30 = tpu.matmul %18, %29, %cst_20 {dimension_numbers = #tpu.dot_dimension_numbers<[1], [0], [0], [1], [0, 0, 1, 1], [], []>} : vector<128x128xf32>, vector<128x128xf32>, vector<128x128xf32> -> vector<128x128xf32>
    %31 = arith.addf %27, %30 : vector<128x128xf32>
    %c0_21 = arith.constant 0 : index
    %c0_22 = arith.constant 0 : index
    %32 = vector.load %arg9[%c0_21, %c0_22] : memref<128x128xf32, #tpu.memory_space<vmem>>, vector<128x128xf32>
    tpu.vector_store %arg9[%c0_21, %c0_22], %31 {strides = array<i32>} : memref<128x128xf32, #tpu.memory_space<vmem>>, vector<128x128xf32>,
    %c0_23 = arith.constant 0 : index
    %c0_24 = arith.constant 0 : index
    %33 = vector.load %arg7[%c0_23, %c0_24] : memref<128x1xf32, #tpu.memory_space<vmem>>, vector<128x1xf32>
    tpu.vector_store %arg7[%c0_23, %c0_24], %13 {strides = array<i32>} : memref<128x1xf32, #tpu.memory_space<vmem>>, vector<128x1xf32>,
    %c0_i32_25 = arith.constant 0 : i32
    %34 = arith.cmpi eq, %arg2, %c0_i32_25 : i32
    %35 = arith.extui %34 : i1 to i32
    %c0_i32_26 = arith.constant 0 : i32
    %36 = arith.cmpi ne, %35, %c0_i32_26 : i32
    scf.if %36 {
      %c0_27 = arith.constant 0 : index
      %c0_28 = arith.constant 0 : index
      %37 = vector.load %arg9[%c0_27, %c0_28] : memref<128x128xf32, #tpu.memory_space<vmem>>, vector<128x128xf32>
      %c0_29 = arith.constant 0 : index
      %c0_30 = arith.constant 0 : index
      %38 = vector.load %arg8[%c0_29, %c0_30] : memref<128x1xf32, #tpu.memory_space<vmem>>, vector<128x1xf32>
      %39 = vector.broadcast %38 : vector<128x1xf32> to vector<128x128xf32>
      %40 = arith.divf %37, %39 : vector<128x128xf32>
      %c0_31 = arith.constant 0 : index
      %c0_32 = arith.constant 0 : index
      %c0_33 = arith.constant 0 : index
      %41 = vector.load %arg6[%c0_31, %c0_32, %c0_33] : memref<1x128x128xf32, #tpu.memory_space<vmem>>, vector<1x128x128xf32>
      %42 = vector.shape_cast %41 : vector<1x128x128xf32> to vector<128x128xf32>
      %43 = vector.shape_cast %40 : vector<128x128xf32> to vector<1x128x128xf32>
      tpu.vector_store %arg6[%c0_31, %c0_32, %c0_33], %43 {strides = array<i32>} : memref<1x128x128xf32, #tpu.memory_space<vmem>>, vector<1x128x128xf32>,
    } else {
    }
    return
  }
  func.func @transform_0(%arg0: i32, %arg1: i32, %arg2: i32) -> (i32, i32, i32) {
    %c0_i32 = arith.constant 0 : i32
    %c0_i32_0 = arith.constant 0 : i32
    return %arg0, %arg1, %c0_i32 : i32, i32, i32
  }
  func.func @transform_1(%arg0: i32, %arg1: i32, %arg2: i32) -> (i32, i32, i32) {
    %c0_i32 = arith.constant 0 : i32
    %c0_i32_0 = arith.constant 0 : i32
    return %arg0, %arg2, %c0_i32 : i32, i32, i32
  }
  func.func @transform_2(%arg0: i32, %arg1: i32, %arg2: i32) -> (i32, i32, i32) {
    %c0_i32 = arith.constant 0 : i32
    %c0_i32_0 = arith.constant 0 : i32
    return %arg0, %arg2, %c0_i32 : i32, i32, i32
  }
  func.func @transform_3(%arg0: i32, %arg1: i32, %arg2: i32) -> (i32, i32, i32) {
    %c0_i32 = arith.constant 0 : i32
    %c0_i32_0 = arith.constant 0 : i32
    return %arg0, %arg1, %c0_i32 : i32, i32, i32
  }
}

</mosaic_0001>

<bundles_post_ra>
// kernel: tpu_custom_call.1
= control target key start
LH: loop header
LB: loop body
LE: loop exit
PB: predicated region body
PF: predicated region fallthrough
CT: control target
= control target key end

     0   :  { %s2761_s0 = inlined_call_operand.hbm [shape: f32[2,128,128], index: 0, kind: input, shape index: {}]   ;;  %s2762_s1 = inlined_call_operand.hbm [shape: f32[2,128,128], index: 1, kind: input, shape index: {}]   ;;  %s2763_s2 = inlined_call_operand.hbm [shape: f32[2,128,128], index: 2, kind: input, shape index: {}]   ;;  %s2764_s3 = inlined_call_operand.hbm [shape: f32[2,128,128], index: 3, kind: output, shape index: {}]  }
   0x1   :  { %2770 = sst [smem:[#allocation20_spill]] %s2762_s1 }
   0x2   :  { %8 = vsyncpa [#allocation6], 0 }
   0x3   :  { %10 = vsyncpa [#allocation6 + $0x1], 0 }
   0x4   :  { %11 = vsyncpa [#allocation9], 0 }
   0x5   :  { %13 = vsyncpa [#allocation9 + $0x1], 0 }
   0x6   :  { %14 = vsyncpa [#allocation7], 0 }
   0x7   :  { %16 = vsyncpa [#allocation7 + $0x1], 0  ;;  %s2055_s12 = smov 0   ;;  %s2057_s13 = smov 0  }
   0x8   :  { %s2059_s14 = smov 0   ;;  %s2061_s15 = smov 0  }
   0x9   :  { %s2063_s16 = smov 0   ;;  %s2065_s17 = smov 0  }
   0xa LB: > { %2771 = sst [smem:[#allocation15_spill]] %s2014_s14  ;;  %s2086_s18 = sadd.s32 4294967295, %s2026_s17   ;;  %s2026_s17 = sphi %s2065_s17, %s22_s17   ;;  %s2022_s16 = sphi %s2063_s16, %s2793_s16   ;;  %s2018_s15 = sphi %s2061_s15, %s2792_s15   ;;  %s2014_s14 = sphi %s2059_s14, %s2796_s14   ;;  %s2010_s13 = sphi %s2057_s13, %s2795_s13   ;;  %s2006_s12 = sphi %s2055_s12, %s2794_s12  }
   0xb   : > { %2772 = sst [smem:[#allocation16_spill]] %s2022_s16  ;;  %s1582_s19 = sadd.s32 4294967294, %s2026_s17  }
   0xc   : > { %2773 = sst [smem:[#allocation17_spill]] %s2026_s17  ;;  %s41_s20 = sadd.s32 1, %s2022_s16 }
   0xd   : > { %s50_s21 = sadd.s32 1, %s2014_s14  ;;  %p43_p0 = scmp.ge.s32.totalorder %s41_s20, 2 }
   0xe   : > { %p57_p1 = scmp.ne.s32.totalorder %s2014_s14, %s2010_s13  ;;  %p58_p2 = scmp.eq.s32.totalorder %s2026_s17, 0 }
   0xf   : > { %p63_p3 = scmp.ne.s32.totalorder %s2010_s13, %s2006_s12  ;;  %s2798_s20 = smov (%p43_p0, %s41_s20), 0 }
  0x10   : > { %2774 = sst [smem:[#allocation18_spill]] %s2798_s20  ;;  %p2098_p4 = por %p58_p2, %p57_p1 }
  0x11   : > { %p64_p5 = scmp.eq.s32.totalorder %s2086_s18, 0  ;;  %s45_s23 = ssub.s32 %s2022_s16, %s2798_s20 }
  0x12   : > { %p145_p6 = scmp.eq.s32.totalorder %s2086_s18, 1  ;;  %p48_p7 = scmp.eq.s32.totalorder %s45_s23, 0 }
  0x13   : > { %p2106_p8 = por %p64_p5, %p63_p3  ;;  %p151_p10 = scmp.eq.s32.totalorder %s1582_s19, 1 }
  0x14   : > { %p2110_p9 = por %p145_p6, %p57_p1  ;;  %p1584_p12 = scmp.ge.s32.totalorder %s2026_s17, 2 }
  0x15   : > { %s2115_s26 = scalar_select %p48_p7, %s2014_s14, %s50_s21  }
  0x16   : > { %p2117_p11 = por %p151_p10, %p63_p3  ;;  %p1694_p13 = scmp.lt.s32.totalorder %s2026_s17, 2 }
  0x17   : > { %2778 = sst [smem:[#allocation19_spill]] %s2115_s26  ;;  %s171_s28 = sand.u32 1, %s2014_s14  }
  0x18   : > { %s2124_s29 = sshll.u32 %s171_s28, 7  ;;  %s1604_s30 = sshll.u32 %s2022_s16, 7 }
  0x19   : > { %p2129_p0 = pnand %p1694_p13, %p2098_p4  ;;  %s195_s5 = sand.u32 1, %s2026_s17  }
  0x1a   : > { %s2781_s1 = sld [smem:[#allocation20_spill]]  ;;  %s199_s10 = scalar_lea.vmem [#allocation8], %s2124_s29 }
  0x1b   : > { %s209_s11 = sshll.u32 %s199_s10, 4  ;;  %s196_s19 = scalar_lea.sflag [#allocation9], %s195_s5  ;;  %s210_s11 = int_to_ptr.vmem [resolvable:$true] %s209_s11 }
  0x1c   : > { %s2028_s21 = smov 128   ;;  %s2029_s22 = smov 8  }
  0x1d   : > { %p1594_p1 = scmp.ge.s32.totalorder %s2026_s17, 1  ;;  %p241_p2 = scmp.lt.s32.totalorder %s2026_s17, 3 }
  0x1e   : > { %s172_s5 = scalar_lea.sflag [#allocation6], %s171_s28  ;;  %s230_s16 = scalar_lea.hbm %s2763_s2, %s1604_s30 }
  0x1f   : > { %p2142_p3 = pnand %p1594_p1, %p241_p2  ;;  %s231_s26 = sshll.u32 %s230_s16, 4  ;;  %s232_s26 = int_to_ptr.hbm [resolvable:$true] %s231_s26 }
  0x20   : > { %s206_s8 = scalar_lea.hbm %s2781_s1, %s1604_s30  ;;  %s175_s1 = scalar_lea.vmem [#allocation5], %s2124_s29 }
  0x21   : > { %s207_s9 = sshll.u32 %s206_s8, 4  ;;  %s182_s8 = scalar_lea.hbm %s2761_s0, %s1604_s30  ;;  %s208_s9 = int_to_ptr.hbm [resolvable:$true] %s207_s9 }
  0x22   : > { %1686 = dma.hbm_to_vmem [thread:$0]  (!%p2129_p0), %s208_s9, 2048, %s210_s11, %s196_s19, %s2028_s21, %s2028_s21, %s2029_s22  }
  0x23   : > { %s183_s10 = sshll.u32 %s182_s8, 4  ;;  %s185_s20 = sshll.u32 %s175_s1, 4  ;;  %s184_s10 = int_to_ptr.hbm [resolvable:$true] %s183_s10  ;;  %s186_s20 = int_to_ptr.vmem [resolvable:$true] %s185_s20 }
  0x24   : > { %1683 = dma.hbm_to_vmem [thread:$0]  (!%p2129_p0), %s184_s10, 2048, %s186_s20, %s172_s5, %s2028_s21, %s2028_s21, %s2029_s22  }
  0x25   : > { %s223_s14 = scalar_lea.vmem [#allocation10], %s2124_s29  ;;  %245 = sbr.rel (%p2142_p3) target bundleno = 858 (0x35a), region = 32 }
  0x26   : > { %s233_s17 = sshll.u32 %s223_s14, 4  ;;  %s2161_s1 = sand.u32 (!%p2142_p3), 1, %s2010_s13   ;;  %s234_s17 = int_to_ptr.vmem [resolvable:$true] %s233_s17 }
  0x27   : > { %1689 = dma.hbm_to_vmem [thread:$0]  (!%p2129_p0), %s232_s26, 2048, %s234_s17, %s196_s19, %s2028_s21, %s2028_s21, %s2029_s22  }
  0x28   : > { %s2164_s20 = sshll.u32 (!%p2142_p3), %s2161_s1, 7  ;;  %s248_s28 = scalar_lea.sflag (!%p2142_p3), [#allocation6], %s2161_s1 }
  0x29   : > { %s2168_s16 = scalar_lea.vmem (!%p2142_p3), [#allocation5], %s2164_s20 }
  0x2a   : > { %1993 = dma.done.wait (%p2106_p8), %s248_s28, 2048  }
  0x2b   : > { %1995 = vsyncadd (%p2106_p8), %s248_s28, 4294965248  ;;  %s257_s14 = sand.u32 1, %s2086_s18   ;;  %s2176_s26 = scalar_lea.vmem [#allocation8], %s2164_s20 }
  0x2c   : > { %s258_s17 = scalar_lea.sflag [#allocation9], %s257_s14 }
  0x2d   : > { %1997 = dma.done.wait (%p2106_p8), %s258_s17, 4096  }
  0x2e   : > { %1999 = vsyncadd (%p2106_p8), %s258_s17, 4294963200  ;;  %v393_v0 = vld [vmem:[%s2176_s26 + $0x78] sm:$0xff]  ;;  %v392_v1 = vld [vmem:[%s2176_s26 + $0x70] sm:$0xff]  ;;  %vm313_vm0 = vcmask 7168   ;;  %v2030_v50 = vmov -inf   ;;  %s2426_s18 = scalar_lea.vmem [#allocation10], %s2164_s20 }
  0x2f   : > { %394 = vmatpush.xpose.msra.mxu0 %v393_v0  ;;  %1609 = vmatpush.xpose.msra.mxu3 %v393_v0  ;;  %v391_v2 = vld [vmem:[%s2176_s26 + $0x68] sm:$0xff]  ;;  %v390_v3 = vld [vmem:[%s2176_s26 + $0x60] sm:$0xff]  ;;  %v389_v4 = vld [vmem:[%s2176_s26 + $0x58] sm:$0xff]  ;;  %314 = vst.msk [vmem:[#allocation2] sm:$0xff] %vm313_vm0, %v2030_v50  ;;  %s2599_s24 = scalar_lea.vmem [#allocation11], %s2164_s20  ;;  %s1607_s29 = sshll.u32 %s2018_s15, 7 }
  0x30   : > { %1608 = vmatpush.xpose.msra.mxu2 %v393_v0  ;;  %v388_v5 = vld [vmem:[%s2176_s26 + $0x50] sm:$0xff]  ;;  %v387_v6 = vld [vmem:[%s2176_s26 + $0x48] sm:$0xff]  ;;  %v386_v7 = vld [vmem:[%s2176_s26 + $0x40] sm:$0xff]  ;;  %315 = vst.msk [vmem:[#allocation2 + $0x8] sm:$0xff] %vm313_vm0, %v2030_v50  ;;  %s1438_s19 = scalar_lea.hbm %s2764_s3, %s1607_s29  ;;  %s1439_s21 = sshll.u32 %s2599_s24, 4  ;;  %s1440_s21 = int_to_ptr.vmem [resolvable:$true] %s1439_s21 }
  0x31   : > { %v385_v8 = vld [vmem:[%s2176_s26 + $0x38] sm:$0xff]  ;;  %v384_v9 = vld [vmem:[%s2176_s26 + $0x30] sm:$0xff]  ;;  %v383_v10 = vld [vmem:[%s2176_s26 + $0x28] sm:$0xff]  ;;  %316 = vst.msk [vmem:[#allocation2 + $0x10] sm:$0xff] %vm313_vm0, %v2030_v50  ;;  %s1441_s15 = sshll.u32 %s1438_s19, 4  ;;  %s1425_s22 = scalar_lea.sflag [#allocation7], %s2161_s1  ;;  %s1442_s15 = int_to_ptr.hbm [resolvable:$true] %s1441_s15 }
  0x32   : > { %v382_v11 = vld [vmem:[%s2176_s26 + $0x20] sm:$0xff]  ;;  %v381_v12 = vld [vmem:[%s2176_s26 + $0x18] sm:$0xff]  ;;  %v380_v13 = vld [vmem:[%s2176_s26 + $0x10] sm:$0xff]  ;;  %317 = vst.msk [vmem:[#allocation2 + $0x18] sm:$0xff] %vm313_vm0, %v2030_v50  ;;  %s1954_s23 = sshra.s32 %s1442_s15, 4  ;;  %s1960_s10 = scalar_lea.hbm %s2764_s3, 256  ;;  %s1955_s23 = int_to_ptr.hbm [resolvable:$true] %s1954_s23 }
  0x33   : > { %395 = vmatpush.xpose.msra.mxu0 %v392_v1  ;;  %1611 = vmatpush.xpose.msra.mxu3 %v392_v1  ;;  %v379_v14 = vld [vmem:[%s2176_s26 + $0x8] sm:$0xff]  ;;  %v378_v15 = vld [vmem:[%s2176_s26] sm:$0xff]  ;;  %v368_v21 = vld [vmem:[%s2168_s16 + $0x30] sm:$0xff]  ;;  %318 = vst.msk [vmem:[#allocation2 + $0x20] sm:$0xff] %vm313_vm0, %v2030_v50  ;;  %s1956_s6 = scalar_lea.hbm %s1955_s23, 128  ;;  %p1961_p7 = scmp.lt.s32.totalorder %s1955_s23, %s2764_s3 }
  0x34   : > { %1610 = vmatpush.xpose.msra.mxu2 %v392_v1  ;;  %v362_v16 = vld [vmem:[%s2168_s16] sm:$0xff]  ;;  %v367_v18 = vld [vmem:[%s2168_s16 + $0x28] sm:$0xff]  ;;  %v364_v22 = vld [vmem:[%s2168_s16 + $0x10] sm:$0xff]  ;;  %319 = vst.msk [vmem:[#allocation2 + $0x28] sm:$0xff] %vm313_vm0, %v2030_v50  ;;  %v2031_v1 = vmov 0   ;;  %p1957_p4 = scmp.ne.s32.totalorder %s1955_s23, %s1956_s6  ;;  %p1962_p8 = scmp.lt.s32.totalorder %s1960_s10, %s1956_s6 }
  0x35   : > { %v374_v17 = vld [vmem:[%s2168_s16 + $0x60] sm:$0xff]  ;;  %v375_v19 = vld [vmem:[%s2168_s16 + $0x68] sm:$0xff]  ;;  %v376_v23 = vld [vmem:[%s2168_s16 + $0x70] sm:$0xff]  ;;  %320 = vst.msk [vmem:[#allocation2 + $0x30] sm:$0xff] %vm313_vm0, %v2030_v50  ;;  %1751 = vset.pattern.permute.xlu1 %v2031_v1  ;;  %1752 = vset.pattern.permute.xlu2 %v2031_v1 }
  0x36   : > { %v363_v20 = vld [vmem:[%s2168_s16 + $0x8] sm:$0xff]  ;;  %v369_v24 = vld [vmem:[%s2168_s16 + $0x38] sm:$0xff]  ;;  %v370_v27 = vld [vmem:[%s2168_s16 + $0x40] sm:$0xff]  ;;  %321 = vst.msk [vmem:[#allocation2 + $0x38] sm:$0xff] %vm313_vm0, %v2030_v50  ;;  %1753 = vset.pattern.permute.xlu0 %v2031_v1  ;;  %p1958_p5 = pnand %p1957_p4, %p2110_p9  ;;  %p1963_p10 = por %p1962_p8, %p1961_p7 }
  0x37   : > { %396 = vmatpush.xpose.msra.mxu0 %v391_v2  ;;  %1613 = vmatpush.xpose.msra.mxu3 %v391_v2  ;;  %v377_v25 = vld [vmem:[%s2168_s16 + $0x78] sm:$0xff]  ;;  %v366_v28 = vld [vmem:[%s2168_s16 + $0x20] sm:$0xff]  ;;  %v371_v29 = vld [vmem:[%s2168_s16 + $0x48] sm:$0xff]  ;;  %322 = vst.msk [vmem:[#allocation2 + $0x40] sm:$0xff] %vm313_vm0, %v2030_v50 }
  0x38   : > { %1612 = vmatpush.xpose.msra.mxu2 %v391_v2  ;;  %v365_v26 = vld [vmem:[%s2168_s16 + $0x18] sm:$0xff]  ;;  %v372_v30 = vld [vmem:[%s2168_s16 + $0x50] sm:$0xff]  ;;  %323 = vst.msk [vmem:[#allocation2 + $0x48] sm:$0xff] %vm313_vm0, %v2030_v50  ;;  %v2032_v2 = vmov 0.0   ;;  %p1959_p6 = pneg %p1958_p5 }
  0x39   : > { %v373_v31 = vld [vmem:[%s2168_s16 + $0x58] sm:$0xff]  ;;  %324 = vst.msk [vmem:[#allocation2 + $0x50] sm:$0xff] %vm313_vm0, %v2030_v50 }
  0x3a   : > { %325 = vst.msk [vmem:[#allocation2 + $0x58] sm:$0xff] %vm313_vm0, %v2030_v50  ;;  %p1964_p13 = pnand %p1963_p10, %p1959_p6 }
  0x3b   : > { %397 = vmatpush.xpose.msra.mxu0 %v390_v3  ;;  %1615 = vmatpush.xpose.msra.mxu3 %v390_v3  ;;  %326 = vst.msk [vmem:[#allocation2 + $0x60] sm:$0xff] %vm313_vm0, %v2030_v50 }
  0x3c   : > { %1614 = vmatpush.xpose.msra.mxu2 %v390_v3  ;;  %327 = vst.msk [vmem:[#allocation2 + $0x68] sm:$0xff] %vm313_vm0, %v2030_v50  ;;  %v2294_v3 = vld [vmem:[#allocation2] sm:$0xff] }
  0x3d   : > { %328 = vst.msk [vmem:[#allocation2 + $0x70] sm:$0xff] %vm313_vm0, %v2030_v50 }
  0x3e   : > { %329 = vst.msk [vmem:[#allocation2 + $0x78] sm:$0xff] %vm313_vm0, %v2030_v50 }
  0x3f   : > { %398 = vmatpush.xpose.msra.mxu0 %v389_v4  ;;  %1617 = vmatpush.xpose.msra.mxu3 %v389_v4  ;;  %330 = vst.msk [vmem:[#allocation3] sm:$0xff] %vm313_vm0, %v2032_v2 }
  0x40   : > { %1616 = vmatpush.xpose.msra.mxu2 %v389_v4  ;;  %331 = vst.msk [vmem:[#allocation3 + $0x8] sm:$0xff] %vm313_vm0, %v2032_v2  ;;  %v2385_v1 = vld [vmem:[#allocation2 + $0x50] sm:$0xff] }
  0x41   : > { %332 = vst.msk [vmem:[#allocation3 + $0x10] sm:$0xff] %vm313_vm0, %v2032_v2 }
  0x42   : > { %333 = vst.msk [vmem:[#allocation3 + $0x18] sm:$0xff] %vm313_vm0, %v2032_v2 }
  0x43   : > { %399 = vmatpush.xpose.msra.mxu0 %v388_v5  ;;  %1619 = vmatpush.xpose.msra.mxu3 %v388_v5  ;;  %334 = vst.msk [vmem:[#allocation3 + $0x20] sm:$0xff] %vm313_vm0, %v2032_v2 }
  0x44   : > { %1618 = vmatpush.xpose.msra.mxu2 %v388_v5  ;;  %335 = vst.msk [vmem:[#allocation3 + $0x28] sm:$0xff] %vm313_vm0, %v2032_v2 }
  0x45   : > { %336 = vst.msk [vmem:[#allocation3 + $0x30] sm:$0xff] %vm313_vm0, %v2032_v2 }
  0x46   : > { %337 = vst.msk [vmem:[#allocation3 + $0x38] sm:$0xff] %vm313_vm0, %v2032_v2 }
  0x47   : > { %400 = vmatpush.xpose.msra.mxu0 %v387_v6  ;;  %1621 = vmatpush.xpose.msra.mxu3 %v387_v6  ;;  %338 = vst.msk [vmem:[#allocation3 + $0x40] sm:$0xff] %vm313_vm0, %v2032_v2 }
  0x48   : > { %1620 = vmatpush.xpose.msra.mxu2 %v387_v6  ;;  %339 = vst.msk [vmem:[#allocation3 + $0x48] sm:$0xff] %vm313_vm0, %v2032_v2  ;;  %v2302_v6 = vld [vmem:[#allocation2 + $0x28] sm:$0xff] }
  0x49   : > { %340 = vst.msk [vmem:[#allocation3 + $0x50] sm:$0xff] %vm313_vm0, %v2032_v2 }
  0x4a   : > { %341 = vst.msk [vmem:[#allocation3 + $0x58] sm:$0xff] %vm313_vm0, %v2032_v2 }
  0x4b   : > { %401 = vmatpush.xpose.msra.mxu0 %v386_v7  ;;  %1623 = vmatpush.xpose.msra.mxu3 %v386_v7  ;;  %342 = vst.msk [vmem:[#allocation3 + $0x60] sm:$0xff] %vm313_vm0, %v2032_v2 }
  0x4c   : > { %1622 = vmatpush.xpose.msra.mxu2 %v386_v7  ;;  %343 = vst.msk [vmem:[#allocation3 + $0x68] sm:$0xff] %vm313_vm0, %v2032_v2  ;;  %v2304_v7 = vld [vmem:[#allocation2 + $0x60] sm:$0xff] }
  0x4d   : > { %344 = vst.msk [vmem:[#allocation3 + $0x70] sm:$0xff] %vm313_vm0, %v2032_v2 }
  0x4e   : > { %345 = vst.msk [vmem:[#allocation3 + $0x78] sm:$0xff] %vm313_vm0, %v2032_v2 }
  0x4f   : > { %402 = vmatpush.xpose.msra.mxu0 %v385_v8  ;;  %1625 = vmatpush.xpose.msra.mxu3 %v385_v8 }
  0x50   : > { %1624 = vmatpush.xpose.msra.mxu2 %v385_v8 }
  0x53   : > { %403 = vmatpush.xpose.msra.mxu0 %v384_v9  ;;  %1627 = vmatpush.xpose.msra.mxu3 %v384_v9 }
  0x54   : > { %1626 = vmatpush.xpose.msra.mxu2 %v384_v9 }
  0x57   : > { %404 = vmatpush.xpose.msra.mxu0 %v383_v10  ;;  %1629 = vmatpush.xpose.msra.mxu3 %v383_v10 }
  0x58   : > { %1628 = vmatpush.xpose.msra.mxu2 %v383_v10 }
  0x5b   : > { %405 = vmatpush.xpose.msra.mxu0 %v382_v11  ;;  %1631 = vmatpush.xpose.msra.mxu3 %v382_v11 }
  0x5c   : > { %1630 = vmatpush.xpose.msra.mxu2 %v382_v11 }
  0x5f   : > { %406 = vmatpush.xpose.msra.mxu0 %v381_v12  ;;  %1633 = vmatpush.xpose.msra.mxu3 %v381_v12 }
  0x60   : > { %1632 = vmatpush.xpose.msra.mxu2 %v381_v12  ;;  %v488_v12 = vld [vmem:[#allocation2 + $0x68] sm:$0xff] }
  0x63   : > { %407 = vmatpush.xpose.msra.mxu0 %v380_v13  ;;  %1635 = vmatpush.xpose.msra.mxu3 %v380_v13 }
  0x64   : > { %1634 = vmatpush.xpose.msra.mxu2 %v380_v13 }
  0x67   : > { %408 = vmatpush.xpose.msra.mxu0 %v379_v14  ;;  %1637 = vmatpush.xpose.msra.mxu3 %v379_v14 }
  0x68   : > { %1636 = vmatpush.xpose.msra.mxu2 %v379_v14  ;;  %v2316_v14 = vld [vmem:[#allocation2 + $0x8] sm:$0xff] }
  0x6b   : > { %409 = vmatpush.xpose.msra.mxu0 %v378_v15  ;;  %1639 = vmatpush.xpose.msra.mxu3 %v378_v15 }
  0x6c   : > { %1638 = vmatpush.xpose.msra.mxu2 %v378_v15 }
  0x6e   : > { %410 = vmatmul.f32.vlgmr.msra.gmra.mxu0 %v362_v16  ;;  %446 = vmatmul.f32.vlgmr.msra.gmra.mxu3 %v374_v17 }
  0x6f   : > { %425 = vmatmul.f32.vlgmr.msra.gmra.mxu2 %v367_v18  ;;  %v477_v18 = vld [vmem:[#allocation2 + $0x10] sm:$0xff] }
  0x76   : > { %449 = vmatmul.f32.gmra.mxu3 %v375_v19  ;;  %413 = vmatmul.f32.gmra.mxu0 %v363_v20  ;;  %v2328_v19 = vld [vmem:[#allocation2 + $0x70] sm:$0xff] }
  0x77   : > { %428 = vmatmul.f32.gmra.mxu2 %v368_v21  ;;  %v2330_v21 = vld [vmem:[#allocation2 + $0x30] sm:$0xff] }
  0x7e   : > { %416 = vmatmul.f32.gmra.mxu0 %v364_v22  ;;  %452 = vmatmul.f32.gmra.mxu3 %v376_v23 }
  0x7f   : > { %431 = vmatmul.f32.gmra.mxu2 %v369_v24 }
  0x86   : > { %455 = vmatmul.f32.gmra.mxu3 %v377_v25  ;;  %419 = vmatmul.f32.gmra.mxu0 %v365_v26 }
  0x87   : > { %434 = vmatmul.f32.gmra.mxu2 %v370_v27  ;;  %v482_v27 = vld [vmem:[#allocation2 + $0x38] sm:$0xff] }
  0x8e   : > { %422 = vmatmul.f32.gmra.mxu0 %v366_v28  ;;  %v2341_v28 = vld [vmem:[#allocation2 + $0x40] sm:$0xff] }
  0x8f   : > { %437 = vmatmul.f32.gmra.mxu2 %v371_v29 }
  0x97   : > { %440 = vmatmul.f32.gmra.mxu2 %v372_v30  ;;  %v2343_v30 = vld [vmem:[#allocation2 + $0x78] sm:$0xff] }
  0x9f   : > { %443 = vmatmul.f32.gmra.mxu2 %v373_v31 }
  0xeb   : > { %v411_v32 = vpop.f32.mrf.mxu0 }
  0xec   : > { %v2214_v33 = vmul.f32 0.088388346, %v411_v32 }
  0xee   : > { %491 = vmax.xlane.f32.xlu0 %v2214_v33 }
  0xf1   : > { %v447_v34 = vpop.f32.mrf.mxu3 }
  0xf2   : > { %v2217_v35 = vmul.f32 0.088388346, %v447_v34  ;;  %v426_v36 = vpop.f32.mrf.mxu2 }
  0xf3   : > { %v414_v37 = vpop.f32.mrf.mxu0  ;;  %v2219_v38 = vmul.f32 0.088388346, %v426_v36 }
  0xf4   : > { %v2223_v40 = vmul.f32 0.088388346, %v414_v37 }
  0xf5   : > { %501 = vmax.xlane.f32.xlu2 %v2219_v38 }
  0xf6   : > { %515 = vmax.xlane.f32.xlu0 %v2217_v35 }
  0xf9   : > { %v450_v39 = vpop.f32.mrf.mxu3 }
  0xfa   : > { %v2225_v41 = vmul.f32 0.088388346, %v450_v39  ;;  %v429_v42 = vpop.f32.mrf.mxu2 }
  0xfb   : > { %v417_v43 = vpop.f32.mrf.mxu0  ;;  %v2231_v46 = vmul.f32 0.088388346, %v429_v42  ;;  %v2358_v42 = vld [vmem:[#allocation2 + $0x18] sm:$0xff] }
  0xfc   : > { %517 = vmax.xlane.f32.xlu1 %v2225_v41  ;;  %v2229_v44 = vmul.f32 0.088388346, %v417_v43  ;;  %v2360_v43 = vld [vmem:[#allocation2 + $0x20] sm:$0xff] }
  0xfe   : > { %493 = vmax.xlane.f32.xlu0 %v2223_v40 }
 0x101   : > { %v453_v45 = vpop.f32.mrf.mxu3 }
 0x102   : > { %v432_v47 = vpop.f32.mrf.mxu2  ;;  %v2233_v48 = vmul.f32 0.088388346, %v453_v45 }
 0x103   : > { %v420_v49 = vpop.f32.mrf.mxu0  ;;  %v2240_v51 = vmul.f32 0.088388346, %v432_v47 }
 0x104   : > { %495 = vmax.xlane.f32.xlu1 %v2229_v44  ;;  %519 = vmax.xlane.f32.xlu2 %v2233_v48  ;;  %v2257_v57 = vmul.f32 0.088388346, %v420_v49  ;;  %v2362_v49 = vld [vmem:[#allocation2 + $0x48] sm:$0xff] }
 0x106   : > { %503 = vmax.xlane.f32.xlu0 %v2231_v46 }
 0x109   : > { %v456_v52 = vpop.f32.mrf.mxu3 }
 0x10a   : > { %v2244_v53 = vmul.f32 0.088388346, %v456_v52  ;;  %v435_v54 = vpop.f32.mrf.mxu2 }
 0x10b   : > { %v2247_v55 = vmul.f32 0.088388346, %v435_v54  ;;  %v423_v56 = vpop.f32.mrf.mxu0 }
 0x10c   : > { %505 = vmax.xlane.f32.xlu1 %v2240_v51  ;;  %v2260_v58 = vmul.f32 0.088388346, %v423_v56 }
 0x10d   : > { %507 = vmax.xlane.f32.xlu2 %v2247_v55 }
 0x10e   : > { %521 = vmax.xlane.f32.xlu0 %v2244_v53 }
 0x112   : > { %v438_v59 = vpop.f32.mrf.mxu2 }
 0x113   : > { %v2264_v60 = vmul.f32 0.088388346, %v438_v59 }
 0x114   : > { %497 = vmax.xlane.f32.xlu1 %v2257_v57 }
 0x115   : > { %499 = vmax.xlane.f32.xlu2 %v2260_v58 }
 0x116   : > { %509 = vmax.xlane.f32.xlu0 %v2264_v60 }
 0x11a   : > { %v441_v61 = vpop.f32.mrf.mxu2 }
 0x11b   : > { %v2272_v62 = vmul.f32 0.088388346, %v441_v61 }
 0x11d   : > { %511 = vmax.xlane.f32.xlu1 %v2272_v62 }
 0x122   : > { %v444_v63 = vpop.f32.mrf.mxu2 }
 0x123   : > { %v2275_v0 = vmul.f32 0.088388346, %v444_v63 }
 0x125   : > { %513 = vmax.xlane.f32.xlu2 %v2275_v0 }
 0x161   : > { %v492_v4 = vpop.xlane.xlu0 %491 }
 0x162   : > { %v2297_v5 = vmax.f32 %v2294_v3, %v492_v4 }
 0x164   : > { %1037 = vst.msk [vmem:[#allocation2] sm:$0xff] %vm313_vm0, %v2297_v5  ;;  %589 = vperm.xlu1 %1751, %v2297_v5   ;;  %v539_v63 = vsub.f32 %v2294_v3, %v2297_v5 }
 0x168   : > { %v502_v8 = vpop.xlane.xlu2 %501 }
 0x169   : > { %v516_v9 = vpop.xlane.xlu0 %515  ;;  %v2307_v10 = vmax.f32 %v2302_v6, %v502_v8 }
 0x16a   : > { %v2310_v11 = vmax.f32 %v2304_v7, %v516_v9  ;;  %v555_v9 = vmul.f32 1.442695, %v539_v63 }
 0x16b   : > { %1042 = vst.msk [vmem:[#allocation2 + $0x28] sm:$0xff] %vm313_vm0, %v2307_v10 }
 0x16c   : > { %1049 = vst.msk [vmem:[#allocation2 + $0x60] sm:$0xff] %vm313_vm0, %v2310_v11 }
 0x16f   : > { %v518_v13 = vpop.xlane.xlu1 %517 }
 0x170   : > { %v2318_v15 = vmax.f32 %v488_v12, %v518_v13 }
 0x171   : > { %v494_v16 = vpop.xlane.xlu0 %493 }
 0x172   : > { %1050 = vst.msk [vmem:[#allocation2 + $0x68] sm:$0xff] %vm313_vm0, %v2318_v15  ;;  %v2323_v17 = vmax.f32 %v2316_v14, %v494_v16  ;;  %v552_v61 = vsub.f32 %v488_v12, %v2318_v15 }
 0x174   : > { %1038 = vst.msk [vmem:[#allocation2 + $0x8] sm:$0xff] %vm313_vm0, %v2323_v17  ;;  %594 = vperm.xlu2 %1752, %v2323_v17   ;;  %v581_v2 = vmul.f32 1.442695, %v552_v61  ;;  %v540_v13 = vsub.f32 %v2316_v14, %v2323_v17  ;;  %v2403_v17 = vld [vmem:[#allocation2 + $0x58] sm:$0xff] }
 0x176   : > { %v557_v5 = vmul.f32 1.442695, %v540_v13 }
 0x177   : > { %v496_v20 = vpop.xlane.xlu1 %495  ;;  %v520_v22 = vpop.xlane.xlu2 %519 }
 0x178   : > { %v525_v23 = vmax.f32 %v477_v18, %v496_v20  ;;  %v2333_v24 = vmax.f32 %v2328_v19, %v520_v22 }
 0x179   : > { %v504_v25 = vpop.xlane.xlu0 %503 }
 0x17a   : > { %1039 = vst.msk [vmem:[#allocation2 + $0x10] sm:$0xff] %vm313_vm0, %v525_v23  ;;  %v529_v26 = vmax.f32 %v2330_v21, %v504_v25  ;;  %599 = vperm.xlu0 %1753, %v525_v23   ;;  %v541_v39 = vsub.f32 %v477_v18, %v525_v23  ;;  %v544_v25 = vsub.f32 %v2302_v6, %v2307_v10 }
 0x17b   : > { %1051 = vst.msk [vmem:[#allocation2 + $0x70] sm:$0xff] %vm313_vm0, %v2333_v24  ;;  %v553_v6 = vsub.f32 %v2328_v19, %v2333_v24  ;;  %v938_v19 = vld [vmem:[%s2426_s18 + $0x70] sm:$0xff] }
 0x17c   : > { %1043 = vst.msk [vmem:[#allocation2 + $0x30] sm:$0xff] %vm313_vm0, %v529_v26  ;;  %614 = vperm.xlu2 %1752, %v2307_v10   ;;  %619 = vperm.xlu1 %1751, %v529_v26   ;;  %v559_v45 = vmul.f32 1.442695, %v541_v39  ;;  %v545_v3 = vsub.f32 %v2330_v21, %v529_v26  ;;  %v551_v26 = vsub.f32 %v2304_v7, %v2310_v11  ;;  %v939_v7 = vld [vmem:[%s2426_s18 + $0x78] sm:$0xff]  ;;  %v936_v39 = vld [vmem:[%s2426_s18 + $0x60] sm:$0xff] }
 0x17d   : > { %940 = vmatpush.msrb.mxu0 %v939_v7  ;;  %1640 = vmatpush.msra.mxu1 %v939_v7 }
 0x17e   : > { %1754 = vpow2.f32 %v559_v45  ;;  %v567_v22 = vmul.f32 1.442695, %v545_v3  ;;  %1641 = vmatpush.msrb.mxu3 %v939_v7 }
 0x17f   : > { %v506_v29 = vpop.xlane.xlu1 %505  ;;  %1756 = vpow2.f32 %v581_v2  ;;  %941 = vmatpush.msrb.mxu0 %v938_v19  ;;  %1642 = vmatpush.msra.mxu1 %v938_v19 }
 0x180   : > { %v530_v31 = vmax.f32 %v482_v27, %v506_v29  ;;  %v508_v32 = vpop.xlane.xlu2 %507  ;;  %1758 = vpow2.f32 %v555_v9  ;;  %1643 = vmatpush.msrb.mxu3 %v938_v19 }
 0x181   : > { %v522_v34 = vpop.xlane.xlu0 %521  ;;  %v2346_v36 = vmax.f32 %v2341_v28, %v508_v32  ;;  %1760 = vpow2.f32 %v557_v5 }
 0x182   : > { %1044 = vst.msk [vmem:[#allocation2 + $0x38] sm:$0xff] %vm313_vm0, %v530_v31  ;;  %649 = vperm.xlu0 %1753, %v2310_v11   ;;  %v2351_v37 = vmax.f32 %v2343_v30, %v522_v34  ;;  %v546_v16 = vsub.f32 %v482_v27, %v530_v31  ;;  %v583_v34 = vmul.f32 1.442695, %v553_v6 }
 0x183   : > { %1045 = vst.msk [vmem:[#allocation2 + $0x40] sm:$0xff] %vm313_vm0, %v2346_v36 }
 0x184   : > { %659 = vperm.xlu1 %1751, %v2333_v24   ;;  %1052 = vst.msk [vmem:[#allocation2 + $0x78] sm:$0xff] %vm313_vm0, %v2351_v37  ;;  %v2387_v8 = vpop.eup %1754  ;;  %v569_v18 = vmul.f32 1.442695, %v546_v16  ;;  %v937_v24 = vld [vmem:[%s2426_s18 + $0x68] sm:$0xff]  ;;  %v554_v61 = vsub.f32 %v2343_v30, %v2351_v37  ;;  %v931_v30 = vld [vmem:[%s2426_s18 + $0x38] sm:$0xff]  ;;  %v930_v16 = vld [vmem:[%s2426_s18 + $0x30] sm:$0xff] }
 0x185   : > { %v2399_v20 = vpop.eup %1756  ;;  %942 = vmatpush.msrb.mxu0 %v937_v24  ;;  %1644 = vmatpush.msra.mxu1 %v937_v24 }
 0x186   : > { %v2405_v23 = vpop.eup %1758  ;;  %1762 = vpow2.f32 %v569_v18  ;;  %1645 = vmatpush.msrb.mxu3 %v937_v24  ;;  %v585_v9 = vmul.f32 1.442695, %v554_v61  ;;  %v929_v18 = vld [vmem:[%s2426_s18 + $0x28] sm:$0xff] }
 0x187   : > { %v498_v47 = vpop.xlane.xlu1 %497  ;;  %1764 = vpow2.f32 %v567_v22  ;;  %v2417_v27 = vpop.eup %1760  ;;  %943 = vmatpush.msrb.mxu0 %v936_v39  ;;  %1646 = vmatpush.msra.mxu1 %v936_v39  ;;  %v928_v22 = vld [vmem:[%s2426_s18 + $0x20] sm:$0xff] }
 0x188   : > { %v2365_v50 = vmax.f32 %v2358_v42, %v498_v47  ;;  %v500_v52 = vpop.xlane.xlu2 %499  ;;  %1647 = vmatpush.msrb.mxu3 %v936_v39 }
 0x189   : > { %v2368_v54 = vmax.f32 %v2360_v43, %v500_v52  ;;  %v510_v56 = vpop.xlane.xlu0 %509 }
 0x18a   : > { %1040 = vst.msk [vmem:[#allocation2 + $0x18] sm:$0xff] %vm313_vm0, %v2365_v50  ;;  %664 = vperm.xlu0 %1753, %v2351_v37   ;;  %604 = vperm.xlu2 %1752, %v2365_v50   ;;  %v2375_v59 = vmax.f32 %v2362_v49, %v510_v56  ;;  %v542_v32 = vsub.f32 %v2358_v42, %v2365_v50  ;;  %v935_v42 = vld [vmem:[%s2426_s18 + $0x58] sm:$0xff]  ;;  %v934_v56 = vld [vmem:[%s2426_s18 + $0x50] sm:$0xff] }
 0x18b   : > { %1041 = vst.msk [vmem:[#allocation2 + $0x20] sm:$0xff] %vm313_vm0, %v2368_v54  ;;  %v543_v11 = vsub.f32 %v2360_v43, %v2368_v54  ;;  %944 = vmatpush.msrb.mxu0 %v935_v42  ;;  %1648 = vmatpush.msra.mxu1 %v935_v42 }
 0x18c   : > { %629 = vperm.xlu1 %1751, %v2346_v36   ;;  %1046 = vst.msk [vmem:[#allocation2 + $0x48] sm:$0xff] %vm313_vm0, %v2375_v59  ;;  %v2419_v29 = vpop.eup %1762  ;;  %v561_v47 = vmul.f32 1.442695, %v542_v32  ;;  %1649 = vmatpush.msrb.mxu3 %v935_v42  ;;  %v548_v13 = vsub.f32 %v2362_v49, %v2375_v59 }
 0x18d   : > { %v2429_v10 = vpop.eup %1764  ;;  %v563_v45 = vmul.f32 1.442695, %v543_v11  ;;  %945 = vmatpush.msrb.mxu0 %v934_v56  ;;  %1650 = vmatpush.msra.mxu1 %v934_v56 }
 0x18e   : > { %1651 = vmatpush.msrb.mxu3 %v934_v56  ;;  %v573_v5 = vmul.f32 1.442695, %v548_v13 }
 0x190   : > { %v512_v4 = vpop.xlane.xlu1 %511 }
 0x191   : > { %v2390_v12 = vmax.f32 %v2385_v1, %v512_v4 }
 0x192   : > { %840 = vperm.xlu0 %1753, %v2387_v8   ;;  %624 = vperm.xlu2 %1752, %v530_v31   ;;  %v579_v31 = vmul.f32 1.442695, %v551_v26  ;;  %v926_v26 = vld [vmem:[%s2426_s18 + $0x10] sm:$0xff] }
 0x193   : > { %1047 = vst.msk [vmem:[#allocation2 + $0x50] sm:$0xff] %vm313_vm0, %v2390_v12  ;;  %v549_v52 = vsub.f32 %v2385_v1, %v2390_v12  ;;  %v933_v1 = vld [vmem:[%s2426_s18 + $0x48] sm:$0xff] }
 0x194   : > { %609 = vperm.xlu1 %1751, %v2368_v54   ;;  %v547_v54 = vsub.f32 %v2341_v28, %v2346_v36  ;;  %946 = vmatpush.msrb.mxu0 %v933_v1  ;;  %v932_v36 = vld [vmem:[%s2426_s18 + $0x40] sm:$0xff] }
 0x195   : > { %v575_v63 = vmul.f32 1.442695, %v549_v52  ;;  %1652 = vmatpush.msra.mxu1 %v933_v1  ;;  %1653 = vmatpush.msrb.mxu3 %v933_v1 }
 0x196   : > { %v571_v2 = vmul.f32 1.442695, %v547_v54  ;;  %947 = vmatpush.msrb.mxu0 %v932_v36 }
 0x197   : > { %1654 = vmatpush.msra.mxu1 %v932_v36  ;;  %1655 = vmatpush.msrb.mxu3 %v932_v36 }
 0x198   : > { %v514_v14 = vpop.xlane.xlu2 %513  ;;  %948 = vmatpush.msrb.mxu0 %v931_v30 }
 0x199   : > { %v2410_v21 = vmax.f32 %v2403_v17, %v514_v14  ;;  %1656 = vmatpush.msra.mxu1 %v931_v30  ;;  %1657 = vmatpush.msrb.mxu3 %v931_v30 }
 0x19a   : > { %895 = vperm.xlu0 %1753, %v2399_v20   ;;  %654 = vperm.xlu2 %1752, %v2318_v15   ;;  %v565_v15 = vmul.f32 1.442695, %v544_v25  ;;  %v927_v25 = vld [vmem:[%s2426_s18 + $0x18] sm:$0xff] }
 0x19b   : > { %1048 = vst.msk [vmem:[#allocation2 + $0x58] sm:$0xff] %vm313_vm0, %v2410_v21  ;;  %949 = vmatpush.msrb.mxu0 %v930_v16  ;;  %1658 = vmatpush.msra.mxu1 %v930_v16 }
 0x19c   : > { %830 = vperm.xlu1 %1751, %v2405_v23   ;;  %1766 = vpow2.f32 %v565_v15  ;;  %1659 = vmatpush.msrb.mxu3 %v930_v16 }
 0x19d   : > { %1768 = vpow2.f32 %v579_v31  ;;  %950 = vmatpush.msrb.mxu0 %v929_v18  ;;  %1660 = vmatpush.msra.mxu1 %v929_v18  ;;  %v924_v31 = vld [vmem:[%s2426_s18] sm:$0xff] }
 0x19e   : > { %1770 = vpow2.f32 %v583_v34  ;;  %1661 = vmatpush.msrb.mxu3 %v929_v18 }
 0x19f   : > { %1772 = vpow2.f32 %v563_v45  ;;  %951 = vmatpush.msrb.mxu0 %v928_v22  ;;  %1662 = vmatpush.msra.mxu1 %v928_v22 }
 0x1a0   : > { %1774 = vpow2.f32 %v561_v47  ;;  %1663 = vmatpush.msrb.mxu3 %v928_v22 }
 0x1a1   : > { %1776 = vpow2.f32 %v575_v63  ;;  %952 = vmatpush.msrb.mxu0 %v927_v25  ;;  %1664 = vmatpush.msra.mxu1 %v927_v25 }
 0x1a2   : > { %865 = vperm.xlu0 %1753, %v2419_v29   ;;  %835 = vperm.xlu2 %1752, %v2417_v27   ;;  %v2439_v43 = vpop.eup %1766  ;;  %1778 = vpow2.f32 %v571_v2 }
 0x1a3   : > { %v2446_v50 = vpop.eup %1768  ;;  %1780 = vpow2.f32 %v585_v9  ;;  %953 = vmatpush.msrb.mxu0 %v926_v26  ;;  %1666 = vmatpush.msra.mxu1 %v926_v26 }
 0x1a4   : > { %860 = vperm.xlu1 %1751, %v2429_v10   ;;  %v2455_v28 = vpop.eup %1770  ;;  %1782 = vpow2.f32 %v573_v5  ;;  %1665 = vmatpush.msrb.mxu3 %v927_v25 }
 0x1a5   : > { %v2458_v4 = vpop.eup %1772 }
 0x1a6   : > { %v2463_v37 = vpop.eup %1774  ;;  %1667 = vmatpush.msrb.mxu3 %v926_v26 }
 0x1a7   : > { %v2469_v3 = vpop.eup %1776 }
 0x1a8   : > { %v2472_v49 = vpop.eup %1778 }
 0x1a9   : > { %v2479_v14 = vpop.eup %1780 }
 0x1aa   : > { %634 = vperm.xlu0 %1753, %v2375_v59   ;;  %855 = vperm.xlu2 %1752, %v2439_v43   ;;  %v550_v59 = vsub.f32 %v2403_v17, %v2410_v21  ;;  %v925_v17 = vld [vmem:[%s2426_s18 + $0x8] sm:$0xff]  ;;  %v2486_v6 = vpop.eup %1782 }
 0x1ab   : > { %954 = vmatpush.msrb.mxu0 %v925_v17  ;;  %1668 = vmatpush.msra.mxu1 %v925_v17 }
 0x1ac   : > { %890 = vperm.xlu1 %1751, %v2446_v50   ;;  %v577_v15 = vmul.f32 1.442695, %v550_v59  ;;  %1669 = vmatpush.msrb.mxu3 %v925_v17 }
 0x1ad   : > { %955 = vmatpush.msrb.mxu0 %v924_v31  ;;  %1670 = vmatpush.msra.mxu1 %v924_v31 }
 0x1ae   : > { %1784 = vpow2.f32 %v577_v15  ;;  %1671 = vmatpush.msrb.mxu3 %v924_v31 }
 0x1b2   : > { %850 = vperm.xlu0 %1753, %v2458_v4   ;;  %900 = vperm.xlu2 %1752, %v2455_v28  }
 0x1b4   : > { %845 = vperm.xlu1 %1751, %v2463_v37   ;;  %v2490_v7 = vpop.eup %1784 }
 0x1ba   : > { %880 = vperm.xlu0 %1753, %v2469_v3   ;;  %870 = vperm.xlu2 %1752, %v2472_v49  }
 0x1bc   : > { %905 = vperm.xlu1 %1751, %v2479_v14  }
 0x1c2   : > { %639 = vperm.xlu2 %1752, %v2390_v12  }
 0x1c4   : > { %875 = vperm.xlu1 %1751, %v2486_v6  }
 0x1ca   : > { %885 = vperm.xlu2 %1752, %v2490_v7  }
 0x1cc   : > { %644 = vperm.xlu1 %1751, %v2410_v21  }
 0x1ce   : > { %v595_v11 = vpop.permute.xlu2 %594 }
 0x1cf   : > { %v668_v12 = vsub.f32 %v2223_v40, %v595_v11 }
 0x1d1   : > { %v685_v39 = vmul.f32 1.442695, %v668_v12 }
 0x1d6   : > { %v590_v19 = vpop.permute.xlu1 %589  ;;  %v615_v34 = vpop.permute.xlu2 %614 }
 0x1d7   : > { %v667_v24 = vsub.f32 %v2214_v33, %v590_v19  ;;  %v672_v42 = vsub.f32 %v2219_v38, %v615_v34 }
 0x1d9   : > { %v683_v32 = vmul.f32 1.442695, %v667_v24  ;;  %v693_v63 = vmul.f32 1.442695, %v672_v42 }
 0x1db   : > { %1786 = vpow2.f32 %v683_v32 }
 0x1dc   : > { %1788 = vpow2.f32 %v685_v39 }
 0x1e1   : > { %v1787_v45 = vpop.eup %1786 }
 0x1e2   : > { %956 = vmatmul.f32.vlgmr.msrb.gmra.mxu0 %v1787_v45  ;;  %v1789_v52 = vpop.eup %1788 }
 0x1e4   : > { %v605_v47 = vpop.permute.xlu2 %604 }
 0x1e5   : > { %v670_v40 = vsub.f32 %v2257_v57, %v605_v47 }
 0x1e7   : > { %v689_v1 = vmul.f32 1.442695, %v670_v40 }
 0x1ea   : > { %959 = vmatmul.f32.gmra.mxu0 %v1789_v52 }
 0x1ec   : > { %v600_v54 = vpop.permute.xlu0 %599  ;;  %v625_v21 = vpop.permute.xlu2 %624 }
 0x1ed   : > { %v669_v56 = vsub.f32 %v2229_v44, %v600_v54  ;;  %v674_v22 = vsub.f32 %v2240_v51, %v625_v21 }
 0x1ee   : > { %v620_v61 = vpop.permute.xlu1 %619 }
 0x1ef   : > { %v687_v33 = vmul.f32 1.442695, %v669_v56  ;;  %v673_v57 = vsub.f32 %v2231_v46, %v620_v61  ;;  %v697_v15 = vmul.f32 1.442695, %v674_v22 }
 0x1f1   : > { %1790 = vpow2.f32 %v687_v33  ;;  %v695_v25 = vmul.f32 1.442695, %v673_v57 }
 0x1f2   : > { %1792 = vpow2.f32 %v693_v63 }
 0x1f3   : > { %747 = vadd.xlane.f32.xlu2 %v1787_v45  ;;  %1794 = vpow2.f32 %v689_v1 }
 0x1f4   : > { %v650_v2 = vpop.permute.xlu0 %649  ;;  %v655_v36 = vpop.permute.xlu2 %654 }
 0x1f5   : > { %v679_v9 = vsub.f32 %v2217_v35, %v650_v2  ;;  %v680_v30 = vsub.f32 %v2225_v41, %v655_v36 }
 0x1f6   : > { %v660_v38 = vpop.permute.xlu1 %659  ;;  %749 = vadd.xlane.f32.xlu1 %v1789_v52 }
 0x1f7   : > { %v1791_v13 = vpop.eup %1790  ;;  %v707_v16 = vmul.f32 1.442695, %v679_v9  ;;  %v709_v44 = vmul.f32 1.442695, %v680_v30  ;;  %v681_v5 = vsub.f32 %v2233_v48, %v660_v38 }
 0x1f8   : > { %962 = vmatmul.f32.vlgmr.msra.gmra.mxu1 %v1791_v13  ;;  %v1793_v59 = vpop.eup %1792 }
 0x1f9   : > { %1796 = vpow2.f32 %v707_v16  ;;  %v711_v18 = vmul.f32 1.442695, %v681_v5  ;;  %v1795_v26 = vpop.eup %1794 }
 0x1fa   : > { %1798 = vpow2.f32 %v709_v44 }
 0x1fb   : > { %1800 = vpow2.f32 %v711_v18  ;;  %757 = vadd.xlane.f32.xlu2 %v1793_v59 }
 0x1fc   : > { %v665_v35 = vpop.permute.xlu0 %664  ;;  %v2504_v41 = vpop.permute.xlu2 %835  ;;  %1802 = vpow2.f32 %v695_v25 }
 0x1fd   : > { %1804 = vpow2.f32 %v697_v15  ;;  %v682_v51 = vsub.f32 %v2244_v53, %v665_v35  ;;  %v715_v35 = vld [vmem:[#allocation3] sm:$0xff] }
 0x1fe   : > { %v630_v17 = vpop.permute.xlu1 %629  ;;  %v731_v25 = vmul.f32 %v2405_v23, %v715_v35 }
 0x1ff   : > { %v2506_v48 = vpop.eup %1796  ;;  %v675_v11 = vsub.f32 %v2247_v55, %v630_v17  ;;  %v713_v32 = vmul.f32 1.442695, %v682_v51  ;;  %v720_v51 = vld [vmem:[#allocation3 + $0x28] sm:$0xff] }
 0x200   : > { %v1799_v31 = vpop.eup %1798  ;;  %771 = vadd.xlane.f32.xlu0 %v2506_v48  ;;  %965 = vmatmul.f32.gmra.mxu1 %v1795_v26 }
 0x201   : > { %v1801_v46 = vpop.eup %1800  ;;  %995 = vmatmul.f32.vlgmr.msrb.gmra.mxu3 %v1799_v31  ;;  %773 = vadd.xlane.f32.xlu1 %v1799_v31  ;;  %v699_v47 = vmul.f32 1.442695, %v675_v11  ;;  %1806 = vpow2.f32 %v713_v32 }
 0x202   : > { %v1803_v34 = vpop.eup %1802 }
 0x203   : > { %775 = vadd.xlane.f32.xlu2 %v1801_v46  ;;  %v1805_v45 = vpop.eup %1804 }
 0x204   : > { %v2511_v19 = vpop.permute.xlu0 %840  ;;  %v2513_v24 = vpop.permute.xlu2 %855 }
 0x206   : > { %v610_v12 = vpop.permute.xlu1 %609 }
 0x207   : > { %v671_v39 = vsub.f32 %v2260_v58, %v610_v12  ;;  %v1807_v54 = vpop.eup %1806 }
 0x208   : > { %759 = vadd.xlane.f32.xlu0 %v1803_v34 }
 0x209   : > { %v691_v52 = vmul.f32 1.442695, %v671_v39  ;;  %998 = vmatmul.f32.gmra.mxu3 %v1801_v46  ;;  %761 = vadd.xlane.f32.xlu1 %v1805_v45  ;;  %v728_v39 = vld [vmem:[#allocation3 + $0x68] sm:$0xff] }
 0x20b   : > { %1808 = vpow2.f32 %v691_v52  ;;  %753 = vadd.xlane.f32.xlu2 %v1795_v26  ;;  %v716_v26 = vld [vmem:[#allocation3 + $0x8] sm:$0xff]  ;;  %v744_v52 = vmul.f32 %v2399_v20, %v728_v39 }
 0x20c   : > { %1810 = vpow2.f32 %v699_v47  ;;  %v2516_v53 = vpop.permute.xlu0 %895  ;;  %v2518_v55 = vpop.permute.xlu2 %900 }
 0x20e   : > { %v2520_v42 = vpop.permute.xlu1 %830 }
 0x210   : > { %751 = vadd.xlane.f32.xlu0 %v1791_v13 }
 0x211   : > { %v1809_v21 = vpop.eup %1808  ;;  %1001 = vmatmul.f32.gmra.mxu3 %v1807_v54 }
 0x212   : > { %v1811_v58 = vpop.eup %1810  ;;  %968 = vmatmul.f32.gmra.mxu1 %v1809_v21  ;;  %755 = vadd.xlane.f32.xlu1 %v1809_v21  ;;  %v910_v21 = vmul.f32 0.0, %v2511_v19 }
 0x213   : > { %763 = vadd.xlane.f32.xlu2 %v1811_v58 }
 0x214   : > { %v2522_v56 = vpop.permute.xlu0 %865  ;;  %v2524_v61 = vpop.permute.xlu2 %870 }
 0x216   : > { %v2526_v33 = vpop.permute.xlu1 %860 }
 0x218   : > { %777 = vadd.xlane.f32.xlu0 %v1807_v54 }
 0x21a   : > { %971 = vmatmul.f32.gmra.mxu1 %v1793_v59 }
 0x21c   : > { %v635_v63 = vpop.permute.xlu0 %634  ;;  %v640_v40 = vpop.permute.xlu2 %639 }
 0x21d   : > { %v676_v1 = vsub.f32 %v2264_v60, %v635_v63  ;;  %v677_v2 = vsub.f32 %v2272_v62, %v640_v40 }
 0x21e   : > { %v2530_v36 = vpop.permute.xlu1 %890 }
 0x21f   : > { %v701_v9 = vmul.f32 1.442695, %v676_v1  ;;  %v703_v30 = vmul.f32 1.442695, %v677_v2 }
 0x221   : > { %1812 = vpow2.f32 %v701_v9 }
 0x222   : > { %1814 = vpow2.f32 %v703_v30  ;;  %974 = vmatmul.f32.gmra.mxu1 %v1803_v34  ;;  %v727_v34 = vld [vmem:[#allocation3 + $0x60] sm:$0xff]  ;;  %v721_v30 = vld [vmem:[#allocation3 + $0x30] sm:$0xff] }
 0x223   : > { %v737_v19 = vmul.f32 %v2429_v10, %v721_v30 }
 0x224   : > { %v2540_v59 = vpop.permute.xlu2 %885  ;;  %v2542_v22 = vpop.permute.xlu0 %850 }
 0x226   : > { %v2532_v38 = vpop.permute.xlu1 %845 }
 0x227   : > { %v1813_v13 = vpop.eup %1812 }
 0x228   : > { %v1815_v16 = vpop.eup %1814  ;;  %765 = vadd.xlane.f32.xlu0 %v1813_v13 }
 0x229   : > { %767 = vadd.xlane.f32.xlu1 %v1815_v16 }
 0x22a   : > { %977 = vmatmul.f32.gmra.mxu1 %v1805_v45  ;;  %v729_v45 = vld [vmem:[#allocation3 + $0x70] sm:$0xff] }
 0x22b   : > { %v745_v1 = vmul.f32 %v2455_v28, %v729_v45 }
 0x22c   : > { %v2547_v11 = vpop.permute.xlu0 %880 }
 0x22e   : > { %v2534_v44 = vpop.permute.xlu1 %905 }
 0x232   : > { %980 = vmatmul.f32.gmra.mxu1 %v1811_v58 }
 0x236   : > { %v2536_v60 = vpop.permute.xlu1 %875 }
 0x23a   : > { %983 = vmatmul.f32.gmra.mxu1 %v1813_v13  ;;  %v722_v13 = vld [vmem:[#allocation3 + $0x38] sm:$0xff] }
 0x23b   : > { %v738_v28 = vmul.f32 %v2419_v29, %v722_v13  ;;  %v719_v29 = vld [vmem:[#allocation3 + $0x20] sm:$0xff] }
 0x23e   : > { %v645_v62 = vpop.permute.xlu1 %644 }
 0x23f   : > { %v678_v5 = vsub.f32 %v2275_v0, %v645_v62  ;;  %v732_v0 = vmul.f32 %v2417_v27, %v716_v26  ;;  %v743_v27 = vmul.f32 %v2446_v50, %v727_v34 }
 0x241   : > { %v705_v57 = vmul.f32 1.442695, %v678_v5  ;;  %v911_v5 = vmul.f32 0.0, %v2532_v38 }
 0x242   : > { %986 = vmatmul.f32.gmra.mxu1 %v1815_v16  ;;  %v718_v16 = vld [vmem:[#allocation3 + $0x18] sm:$0xff] }
 0x243   : > { %1816 = vpow2.f32 %v705_v57  ;;  %v734_v26 = vmul.f32 %v2463_v37, %v718_v16  ;;  %v735_v37 = vmul.f32 %v2458_v4, %v719_v29 }
 0x249   : > { %v1817_v18 = vpop.eup %1816 }
 0x24a   : > { %769 = vadd.xlane.f32.xlu2 %v1817_v18  ;;  %989 = vmatmul.f32.gmra.mxu1 %v1817_v18 }
 0x252   : > { %992 = vmatmul.f32.gmra.mxu1 %v2506_v48  ;;  %v736_v48 = vmul.f32 %v2439_v43, %v720_v51 }
 0x266   : > { %v748_v15 = vpop.xlane.xlu2 %747 }
 0x267   : > { %v779_v17 = vadd.f32 %v748_v15, %v731_v25 }
 0x269   : > { %796 = vst.msk [vmem:[#allocation3] sm:$0xff] %vm313_vm0, %v779_v17  ;;  %v750_v31 = vpop.xlane.xlu1 %749 }
 0x26a   : > { %v780_v46 = vadd.f32 %v750_v31, %v732_v0  ;;  %v717_v31 = vld [vmem:[#allocation3 + $0x10] sm:$0xff] }
 0x26b   : > { %v733_v38 = vmul.f32 %v2387_v8, %v717_v31 }
 0x26c   : > { %797 = vst.msk [vmem:[#allocation3 + $0x8] sm:$0xff] %vm313_vm0, %v780_v46  ;;  %v723_v46 = vld [vmem:[#allocation3 + $0x40] sm:$0xff] }
 0x26e   : > { %v758_v32 = vpop.xlane.xlu2 %757 }
 0x26f   : > { %v784_v12 = vadd.f32 %v758_v32, %v736_v48 }
 0x270   : > { %v1072_v23 = vld [vmem:[#allocation3] sm:$0xff] }
 0x271   : > { %801 = vst.msk [vmem:[#allocation3 + $0x28] sm:$0xff] %vm313_vm0, %v784_v12  ;;  %1090 = vperm.xlu0 %1753, %v1072_v23   ;;  %v739_v12 = vmul.f32 %v2472_v49, %v723_v46 }
 0x273   : > { %v772_v47 = vpop.xlane.xlu0 %771  ;;  %v1073_v54 = vld [vmem:[#allocation3 + $0x8] sm:$0xff] }
 0x274   : > { %v791_v58 = vadd.f32 %v772_v47, %v743_v27  ;;  %v774_v63 = vpop.xlane.xlu1 %773  ;;  %1095 = vperm.xlu2 %1752, %v1073_v54   ;;  %v730_v47 = vld [vmem:[#allocation3 + $0x78] sm:$0xff] }
 0x275   : > { %v792_v43 = vadd.f32 %v774_v63, %v744_v52  ;;  %v963_v40 = vpop.f32.mrf.mxu1  ;;  %v746_v8 = vmul.f32 %v2479_v14, %v730_v47 }
 0x276   : > { %808 = vst.msk [vmem:[#allocation3 + $0x60] sm:$0xff] %vm313_vm0, %v791_v58  ;;  %v2557_v2 = vadd.f32 %v963_v40, %v910_v21  ;;  %v776_v9 = vpop.xlane.xlu2 %775  ;;  %v724_v40 = vld [vmem:[#allocation3 + $0x48] sm:$0xff] }
 0x277   : > { %809 = vst.msk [vmem:[#allocation3 + $0x68] sm:$0xff] %vm313_vm0, %v792_v43  ;;  %v793_v50 = vadd.f32 %v776_v9, %v745_v1  ;;  %v725_v1 = vld [vmem:[#allocation3 + $0x50] sm:$0xff]  ;;  %v740_v14 = vmul.f32 %v2486_v6, %v724_v40 }
 0x278   : > { %v1077_v20 = vld [vmem:[#allocation3 + $0x28] sm:$0xff] }
 0x279   : > { %810 = vst.msk [vmem:[#allocation3 + $0x70] sm:$0xff] %vm313_vm0, %v793_v50  ;;  %1115 = vperm.xlu1 %1751, %v1077_v20   ;;  %v741_v50 = vmul.f32 %v2469_v3, %v725_v1 }
 0x27b   : > { %v760_v62 = vpop.xlane.xlu0 %759 }
 0x27c   : > { %v785_v57 = vadd.f32 %v760_v62, %v737_v19  ;;  %v762_v18 = vpop.xlane.xlu1 %761 }
 0x27d   : > { %v786_v35 = vadd.f32 %v762_v18, %v738_v28  ;;  %v966_v25 = vpop.f32.mrf.mxu1  ;;  %v1084_v15 = vld [vmem:[#allocation3 + $0x60] sm:$0xff] }
 0x27e   : > { %802 = vst.msk [vmem:[#allocation3 + $0x30] sm:$0xff] %vm313_vm0, %v785_v57  ;;  %v2566_v17 = vadd.f32 %v966_v25, %v911_v5  ;;  %v754_v0 = vpop.xlane.xlu2 %753  ;;  %1150 = vperm.xlu0 %1753, %v1084_v15   ;;  %v1085_v6 = vld [vmem:[#allocation3 + $0x68] sm:$0xff]  ;;  %v917_v57 = vmul.f32 0.0, %v2536_v60  ;;  %v726_v25 = vld [vmem:[#allocation3 + $0x58] sm:$0xff] }
 0x27f   : > { %803 = vst.msk [vmem:[#allocation3 + $0x38] sm:$0xff] %vm313_vm0, %v786_v35  ;;  %v782_v10 = vadd.f32 %v754_v0, %v734_v26  ;;  %v742_v26 = vmul.f32 %v2490_v7, %v726_v25 }
 0x280   : > { %v1086_v29 = vld [vmem:[#allocation3 + $0x70] sm:$0xff] }
 0x281   : > { %799 = vst.msk [vmem:[#allocation3 + $0x18] sm:$0xff] %vm313_vm0, %v782_v10 }
 0x283   : > { %v752_v51 = vpop.xlane.xlu0 %751 }
 0x284   : > { %v781_v48 = vadd.f32 %v752_v51, %v733_v38  ;;  %v957_v38 = vpop.f32.mrf.mxu0 }
 0x285   : > { %v756_v32 = vpop.xlane.xlu1 %755  ;;  %v1078_v34 = vld [vmem:[#allocation3 + $0x30] sm:$0xff] }
 0x286   : > { %798 = vst.msk [vmem:[#allocation3 + $0x10] sm:$0xff] %vm313_vm0, %v781_v48  ;;  %v783_v23 = vadd.f32 %v756_v32, %v735_v37  ;;  %v764_v39 = vpop.xlane.xlu2 %763  ;;  %v1079_v27 = vld [vmem:[#allocation3 + $0x38] sm:$0xff]  ;;  %1120 = vperm.xlu0 %1753, %v1078_v34  }
 0x287   : > { %v787_v45 = vadd.f32 %v764_v39, %v739_v12  ;;  %1125 = vperm.xlu2 %1752, %v1079_v27   ;;  %v909_v12 = vmul.f32 0.0, %v2504_v41 }
 0x288   : > { %800 = vst.msk [vmem:[#allocation3 + $0x20] sm:$0xff] %vm313_vm0, %v783_v23  ;;  %v1075_v49 = vld [vmem:[#allocation3 + $0x18] sm:$0xff] }
 0x289   : > { %804 = vst.msk [vmem:[#allocation3 + $0x40] sm:$0xff] %vm313_vm0, %v787_v45 }
 0x28b   : > { %v778_v4 = vpop.xlane.xlu0 %777 }
 0x28c   : > { %v794_v52 = vadd.f32 %v778_v4, %v746_v8  ;;  %v960_v7 = vpop.f32.mrf.mxu0 }
 0x28d   : > { %v1074_v54 = vld [vmem:[#allocation3 + $0x10] sm:$0xff]  ;;  %v1006_v39 = vadd.f32 %v960_v7, %v909_v12 }
 0x28e   : > { %811 = vst.msk [vmem:[#allocation3 + $0x78] sm:$0xff] %vm313_vm0, %v794_v52  ;;  %1100 = vperm.xlu1 %1751, %v1074_v54   ;;  %1105 = vperm.xlu0 %1753, %v1075_v49  }
 0x28f   : > { %v2578_v21 = vpop.f32.mrf.mxu1  ;;  %v1076_v58 = vld [vmem:[#allocation3 + $0x20] sm:$0xff] }
 0x290   : > { %1110 = vperm.xlu2 %1752, %v1076_v58   ;;  %v1080_v63 = vld [vmem:[#allocation3 + $0x40] sm:$0xff] }
 0x295   : > { %v1087_v5 = vld [vmem:[#allocation3 + $0x78] sm:$0xff] }
 0x296   : > { %1130 = vperm.xlu1 %1751, %v1080_v63  }
 0x297   : > { %v2580_v43 = vpop.f32.mrf.mxu1 }
 0x29b   : > { %v766_v9 = vpop.xlane.xlu0 %765 }
 0x29c   : > { %v788_v30 = vadd.f32 %v766_v9, %v740_v14  ;;  %v768_v20 = vpop.xlane.xlu1 %767 }
 0x29d   : > { %v789_v13 = vadd.f32 %v768_v20, %v741_v50  ;;  %v915_v20 = vmul.f32 0.0, %v2522_v56 }
 0x29e   : > { %805 = vst.msk [vmem:[#allocation3 + $0x48] sm:$0xff] %vm313_vm0, %v788_v30 }
 0x29f   : > { %806 = vst.msk [vmem:[#allocation3 + $0x50] sm:$0xff] %vm313_vm0, %v789_v13  ;;  %v2586_v19 = vpop.f32.mrf.mxu1 }
 0x2a5   : > { %v1081_v16 = vld [vmem:[#allocation3 + $0x48] sm:$0xff] }
 0x2a6   : > { %v1082_v62 = vld [vmem:[#allocation3 + $0x50] sm:$0xff]  ;;  %1135 = vperm.xlu0 %1753, %v1081_v16  }
 0x2a7   : > { %1140 = vperm.xlu2 %1752, %v1082_v62   ;;  %v2588_v28 = vpop.f32.mrf.mxu1 }
 0x2ae   : > { %1165 = vperm.xlu0 %1753, %v1087_v5  }
 0x2af   : > { %1155 = vperm.xlu2 %1752, %v1085_v6   ;;  %v2590_v3 = vpop.f32.mrf.mxu1  ;;  %v908_v6 = vmul.f32 0.0, %v2520_v42 }
 0x2b7   : > { %v984_v18 = vpop.f32.mrf.mxu1 }
 0x2b8   : > { %v2593_v35 = vadd.f32 %v984_v18, %v917_v57  ;;  %v1012_v57 = vadd.f32 %v2588_v28, %v915_v20 }
 0x2bd   : > { %v770_v15 = vpop.xlane.xlu2 %769 }
 0x2be   : > { %v790_v0 = vadd.f32 %v770_v15, %v742_v26 }
 0x2bf   : > { %v2602_v54 = vpop.f32.mrf.mxu1 }
 0x2c0   : > { %807 = vst.msk [vmem:[#allocation3 + $0x58] sm:$0xff] %vm313_vm0, %v790_v0 }
 0x2c7   : > { %v1083_v10 = vld [vmem:[#allocation3 + $0x58] sm:$0xff] }
 0x2c8   : > { %1145 = vperm.xlu1 %1751, %v1083_v10   ;;  %v1005_v10 = vadd.f32 %v957_v38, %v908_v6 }
 0x2ce   : > { %v1096_v31 = vpop.permute.xlu2 %1095 }
 0x2cf   : > { %1818 = vrcp.f32 %v1096_v31  ;;  %v1194_v48 = vand.u32 2147483648, %v1096_v31  ;;  %v1192_v32 = vand.u32 2147483647, %v1096_v31  ;;  %vm1188_vm2 = vweird.f32 %v1096_v31 }
 0x2d0   : > { %1160 = vperm.xlu1 %1751, %v1086_v29   ;;  %v2618_v29 = vpop.f32.mrf.mxu1 }
 0x2d1   : > { %v1195_v23 = vor.u32 1.1754944e-38, %v1194_v48  ;;  %vm1193_vm4 = vcmp.eq.f32.partialorder %v1192_v32, 8.507059e+37  ;;  %v913_v48 = vmul.f32 0.0, %v2513_v24 }
 0x2d5   : > { %v1819_v46 = vpop.eup %1818 }
 0x2d6   : > { %v1184_v51 = vmul.f32 %v1819_v46, %v1096_v31  ;;  %vm1189_vm1 = vweird.f32 %v1819_v46 }
 0x2d7   : > { %vm1190_vm3 = vmor %vm1188_vm2, %vm1189_vm1 }
 0x2d8   : > { %v1185_v60 = vsub.f32 1.0, %v1184_v51 }
 0x2da   : > { %v1186_v37 = vmul.f32 %v1819_v46, %v1185_v60 }
 0x2dc   : > { %v1187_v34 = vadd.f32 %v1819_v46, %v1186_v37  ;;  %v912_v37 = vmul.f32 0.0, %v2542_v22  ;;  %v1010_v22 = vadd.f32 %v2580_v43, %v913_v48  ;;  %v2650_v48 = vmul.f32 0.0, %v2516_v53 }
 0x2de   : > { %v1191_v27 = vsel %vm1190_vm3, %v1819_v46, %v1187_v34  ;;  %v1009_v24 = vadd.f32 %v2578_v21, %v912_v37 }
 0x2df   : > { %v1196_v45 = vsel %vm1193_vm4, %v1195_v23, %v1191_v27 }
 0x2e0   : > { %v1197_v47 = vmul.f32 %v1196_v45, %v1006_v39 }
 0x2e1   : > { %v1126_v8 = vpop.permute.xlu2 %1125 }
 0x2e2   : > { %1409 = vst [vmem:[%s2599_s24 + $0x8] sm:$0xff] %v1197_v47  ;;  %1820 = vrcp.f32 %v1126_v8  ;;  %v1282_v14 = vand.u32 2147483647, %v1126_v8  ;;  %v1284_v9 = vand.u32 2147483648, %v1126_v8  ;;  %vm1278_vm6 = vweird.f32 %v1126_v8 }
 0x2e3   : > { %v1091_v4 = vpop.permute.xlu0 %1090 }
 0x2e4   : > { %1822 = vrcp.f32 %v1091_v4  ;;  %v1179_v13 = vand.u32 2147483648, %v1091_v4  ;;  %v1177_v5 = vand.u32 2147483647, %v1091_v4  ;;  %vm1283_vm9 = vcmp.eq.f32.partialorder %v1282_v14, 8.507059e+37 }
 0x2e5   : > { %v1285_v18 = vor.u32 1.1754944e-38, %v1284_v9  ;;  %vm1173_vm10 = vweird.f32 %v1091_v4 }
 0x2e6   : > { %v1180_v42 = vor.u32 1.1754944e-38, %v1179_v13  ;;  %vm1178_vm12 = vcmp.eq.f32.partialorder %v1177_v5, 8.507059e+37  ;;  %v993_v13 = vpop.f32.mrf.mxu1 }
 0x2e8   : > { %v1821_v52 = vpop.eup %1820 }
 0x2e9   : > { %v1274_v41 = vmul.f32 %v1821_v52, %v1126_v8  ;;  %vm1279_vm5 = vweird.f32 %v1821_v52 }
 0x2ea   : > { %v1823_v49 = vpop.eup %1822  ;;  %v2604_v58 = vpop.permute.xlu2 %1110  ;;  %vm1280_vm8 = vmor %vm1278_vm6, %vm1279_vm5 }
 0x2eb   : > { %v1275_v63 = vsub.f32 1.0, %v1274_v41  ;;  %v1169_v40 = vmul.f32 %v1823_v49, %v1091_v4  ;;  %1824 = vrcp.f32 %v2604_v58  ;;  %v2607_v1 = vpop.permute.xlu1 %1115  ;;  %vm1174_vm7 = vweird.f32 %v1823_v49 }
 0x2ec   : > { %1826 = vrcp.f32 %v2607_v1  ;;  %vm1175_vm11 = vmor %vm1173_vm10, %vm1174_vm7  ;;  %v1237_v12 = vand.u32 2147483647, %v2604_v58  ;;  %v1239_v34 = vand.u32 2147483648, %v2604_v58  ;;  %v1252_v27 = vand.u32 2147483647, %v2607_v1 }
 0x2ed   : > { %v1276_v50 = vmul.f32 %v1821_v52, %v1275_v63  ;;  %v1170_v30 = vsub.f32 1.0, %v1169_v40  ;;  %v1254_v45 = vand.u32 2147483648, %v2607_v1  ;;  %vm1233_vm15 = vweird.f32 %v2604_v58 }
 0x2ee   : > { %vm1248_vm0 = vweird.f32 %v2607_v1  ;;  %vm1238_vm2 = vcmp.eq.f32.partialorder %v1237_v12, 8.507059e+37  ;;  %vm1253_vm4 = vcmp.eq.f32.partialorder %v1252_v27, 8.507059e+37 }
 0x2ef   : > { %v1277_v16 = vadd.f32 %v1821_v52, %v1276_v50  ;;  %v1171_v62 = vmul.f32 %v1823_v49, %v1170_v30  ;;  %v1255_v21 = vor.u32 1.1754944e-38, %v1254_v45 }
 0x2f0   : > { %v2613_v25 = vpop.permute.xlu0 %1150 }
 0x2f1   : > { %v1825_v26 = vpop.eup %1824  ;;  %v1281_v15 = vsel %vm1280_vm8, %v1821_v52, %v1277_v16  ;;  %v1172_v0 = vadd.f32 %v1823_v49, %v1171_v62  ;;  %1828 = vrcp.f32 %v2613_v25  ;;  %v920_v62 = vmul.f32 0.0, %v2530_v36 }
 0x2f2   : > { %v1827_v56 = vpop.eup %1826  ;;  %v1286_v31 = vsel %vm1283_vm9, %v1285_v18, %v1281_v15  ;;  %v1229_v28 = vmul.f32 %v1825_v26, %v2604_v58  ;;  %vm1234_vm13 = vweird.f32 %v1825_v26  ;;  %v1357_v58 = vand.u32 2147483647, %v2613_v25 }
 0x2f3   : > { %v1287_v46 = vmul.f32 %v1286_v31, %v1012_v57  ;;  %v1176_v51 = vsel %vm1175_vm11, %v1823_v49, %v1172_v0  ;;  %v1244_v60 = vmul.f32 %v1827_v56, %v2607_v1  ;;  %vm1249_vm14 = vweird.f32 %v1827_v56  ;;  %vm1235_vm1 = vmor %vm1233_vm15, %vm1234_vm13 }
 0x2f4   : > { %v1181_v32 = vsel %vm1178_vm12, %v1180_v42, %v1176_v51  ;;  %v1230_v38 = vsub.f32 1.0, %v1229_v28  ;;  %v1240_v49 = vor.u32 1.1754944e-38, %v1239_v34  ;;  %vm1250_vm3 = vmor %vm1248_vm0, %vm1249_vm14  ;;  %v1359_v1 = vand.u32 2147483648, %v2613_v25 }
 0x2f5   : > { %1415 = vst [vmem:[%s2599_s24 + $0x38] sm:$0xff] %v1287_v46  ;;  %v1182_v7 = vmul.f32 %v1181_v32, %v1005_v10  ;;  %v1245_v23 = vsub.f32 1.0, %v1244_v60  ;;  %vm1353_vm6 = vweird.f32 %v2613_v25  ;;  %v1017_v18 = vadd.f32 %v993_v13, %v920_v62 }
 0x2f6   : > { %v1231_v39 = vmul.f32 %v1825_v26, %v1230_v38  ;;  %v1360_v57 = vor.u32 1.1754944e-38, %v1359_v1  ;;  %vm1358_vm8 = vcmp.eq.f32.partialorder %v1357_v58, 8.507059e+37  ;;  %v914_v51 = vmul.f32 0.0, %v2526_v33 }
 0x2f7   : > { %v1829_v47 = vpop.eup %1828  ;;  %1408 = vst [vmem:[%s2599_s24] sm:$0xff] %v1182_v7  ;;  %v1246_v8 = vmul.f32 %v1827_v56, %v1245_v23  ;;  %v918_v60 = vmul.f32 0.0, %v2547_v11 }
 0x2f8   : > { %v1232_v4 = vadd.f32 %v1825_v26, %v1231_v39  ;;  %v1349_v52 = vmul.f32 %v1829_v47, %v2613_v25  ;;  %v1121_v41 = vpop.permute.xlu0 %1120  ;;  %vm1354_vm5 = vweird.f32 %v1829_v47  ;;  %v1011_v38 = vadd.f32 %v2586_v19, %v914_v51  ;;  %v996_v51 = vpop.f32.mrf.mxu3 }
 0x2f9   : > { %v1247_v63 = vadd.f32 %v1827_v56, %v1246_v8  ;;  %1830 = vrcp.f32 %v1121_v41  ;;  %vm1355_vm7 = vmor %vm1353_vm6, %vm1354_vm5  ;;  %v1267_v25 = vand.u32 2147483647, %v1121_v41  ;;  %v1269_v28 = vand.u32 2147483648, %v1121_v41 }
 0x2fa   : > { %v1236_v40 = vsel %vm1235_vm1, %v1825_v26, %v1232_v4  ;;  %v1350_v43 = vsub.f32 1.0, %v1349_v52  ;;  %vm1263_vm10 = vweird.f32 %v1121_v41  ;;  %v1015_v7 = vadd.f32 %v2602_v54, %v918_v60 }
 0x2fb   : > { %v1241_v14 = vsel %vm1238_vm2, %v1240_v49, %v1236_v40  ;;  %v1251_v9 = vsel %vm1250_vm3, %v1827_v56, %v1247_v63  ;;  %vm1268_vm12 = vcmp.eq.f32.partialorder %v1267_v25, 8.507059e+37  ;;  %v1270_v12 = vor.u32 1.1754944e-38, %v1269_v28 }
 0x2fc   : > { %v1242_v50 = vmul.f32 %v1241_v14, %v1009_v24  ;;  %v1256_v30 = vsel %vm1253_vm4, %v1255_v21, %v1251_v9  ;;  %v1351_v20 = vmul.f32 %v1829_v47, %v1350_v43 }
 0x2fd   : > { %v1257_v16 = vmul.f32 %v1256_v30, %v1010_v22 }
 0x2fe   : > { %1412 = vst [vmem:[%s2599_s24 + $0x20] sm:$0xff] %v1242_v50  ;;  %v1352_v5 = vadd.f32 %v1829_v47, %v1351_v20 }
 0x2ff   : > { %v1831_v6 = vpop.eup %1830  ;;  %1413 = vst [vmem:[%s2599_s24 + $0x28] sm:$0xff] %v1257_v16 }
 0x300   : > { %v1356_v26 = vsel %vm1355_vm7, %v1829_v47, %v1352_v5  ;;  %v1259_v15 = vmul.f32 %v1831_v6, %v1121_v41  ;;  %v1101_v0 = vpop.permute.xlu1 %1100  ;;  %v2642_v31 = vpop.permute.xlu0 %1105  ;;  %vm1264_vm9 = vweird.f32 %v1831_v6 }
 0x301   : > { %v1361_v56 = vsel %vm1358_vm8, %v1360_v57, %v1356_v26  ;;  %v2640_v10 = vpop.permute.xlu2 %1140  ;;  %1832 = vrcp.f32 %v1101_v0  ;;  %vm1265_vm11 = vmor %vm1263_vm10, %vm1264_vm9  ;;  %vm1203_vm13 = vweird.f32 %v1101_v0  ;;  %v1207_v33 = vand.u32 2147483647, %v1101_v0 }
 0x302   : > { %v1362_v36 = vmul.f32 %v1361_v56, %v1017_v18  ;;  %v1260_v42 = vsub.f32 1.0, %v1259_v15  ;;  %1834 = vrcp.f32 %v2640_v10  ;;  %v1327_v45 = vand.u32 2147483647, %v2640_v10 }
 0x303   : > { %1836 = vrcp.f32 %v2642_v31  ;;  %v1329_v24 = vand.u32 2147483648, %v2640_v10  ;;  %vm1323_vm14 = vweird.f32 %v2640_v10  ;;  %v1209_v4 = vand.u32 2147483648, %v1101_v0 }
 0x304   : > { %1420 = vst [vmem:[%s2599_s24 + $0x60] sm:$0xff] %v1362_v36  ;;  %v1261_v46 = vmul.f32 %v1831_v6, %v1260_v42  ;;  %v1222_v49 = vand.u32 2147483647, %v2642_v31  ;;  %v1224_v63 = vand.u32 2147483648, %v2642_v31  ;;  %vm2668_vm1 = vcmp.eq.f32.partialorder %v1207_v33, 8.507059e+37 }
 0x305   : > { %vm2672_vm2 = vcmp.eq.f32.partialorder %v1327_v45, 8.507059e+37  ;;  %v1330_v9 = vor.u32 1.1754944e-38, %v1329_v24  ;;  %vm1218_vm3 = vweird.f32 %v2642_v31  ;;  %v1210_v30 = vor.u32 1.1754944e-38, %v1209_v4 }
 0x306   : > { %v1262_v37 = vadd.f32 %v1831_v6, %v1261_v46  ;;  %vm2680_vm7 = vcmp.eq.f32.partialorder %v1222_v49, 8.507059e+37  ;;  %v1225_v5 = vor.u32 1.1754944e-38, %v1224_v63 }
 0x307   : > { %v1833_v32 = vpop.eup %1832 }
 0x308   : > { %v1835_v34 = vpop.eup %1834  ;;  %v1266_v23 = vsel %vm1265_vm11, %v1831_v6, %v1262_v37  ;;  %v1199_v39 = vmul.f32 %v1833_v32, %v1101_v0  ;;  %v2654_v11 = vpop.permute.xlu1 %1130  ;;  %vm1204_vm15 = vweird.f32 %v1833_v32 }
 0x309   : > { %v1271_v53 = vsel %vm1268_vm12, %v1270_v12, %v1266_v23  ;;  %v1319_v27 = vmul.f32 %v1835_v34, %v2640_v10  ;;  %v2658_v47 = vpop.permute.xlu2 %1155  ;;  %1838 = vrcp.f32 %v2654_v11  ;;  %v1837_v19 = vpop.eup %1836  ;;  %vm1324_vm0 = vweird.f32 %v1835_v34  ;;  %vm1205_vm4 = vmor %vm1203_vm13, %vm1204_vm15 }
 0x30a   : > { %v1272_v54 = vmul.f32 %v1271_v53, %v1011_v38  ;;  %v1200_v22 = vsub.f32 1.0, %v1199_v39  ;;  %1840 = vrcp.f32 %v2658_v47  ;;  %v1214_v52 = vmul.f32 %v1837_v19, %v2642_v31  ;;  %vm1325_vm6 = vmor %vm1323_vm14, %vm1324_vm0 }
 0x30b   : > { %v1320_v8 = vsub.f32 1.0, %v1319_v27  ;;  %vm1219_vm5 = vweird.f32 %v1837_v19  ;;  %v1374_v10 = vand.u32 2147483648, %v2658_v47  ;;  %v1299_v46 = vand.u32 2147483648, %v2654_v11 }
 0x30c   : > { %1414 = vst [vmem:[%s2599_s24 + $0x30] sm:$0xff] %v1272_v54  ;;  %v1201_v41 = vmul.f32 %v1833_v32, %v1200_v22  ;;  %v1215_v43 = vsub.f32 1.0, %v1214_v52  ;;  %vm1220_vm8 = vmor %vm1218_vm3, %vm1219_vm5  ;;  %v1372_v38 = vand.u32 2147483647, %v2658_v47  ;;  %vm1293_vm11 = vweird.f32 %v2654_v11 }
 0x30d   : > { %v1321_v40 = vmul.f32 %v1835_v34, %v1320_v8  ;;  %vm1368_vm12 = vweird.f32 %v2658_v47  ;;  %v1300_v39 = vor.u32 1.1754944e-38, %v1299_v46  ;;  %v1375_v33 = vor.u32 1.1754944e-38, %v1374_v10 }
 0x30e   : > { %v1202_v58 = vadd.f32 %v1833_v32, %v1201_v41  ;;  %v1216_v20 = vmul.f32 %v1837_v19, %v1215_v43  ;;  %vm1373_vm0 = vcmp.eq.f32.partialorder %v1372_v38, 8.507059e+37 }
 0x30f   : > { %v1839_v1 = vpop.eup %1838  ;;  %v1322_v50 = vadd.f32 %v1835_v34, %v1321_v40 }
 0x310   : > { %v1841_v13 = vpop.eup %1840  ;;  %v1206_v16 = vsel %vm1205_vm4, %v1833_v32, %v1202_v58  ;;  %v1289_v6 = vmul.f32 %v1839_v1, %v2654_v11  ;;  %v1217_v26 = vadd.f32 %v1837_v19, %v1216_v20  ;;  %vm1294_vm9 = vweird.f32 %v1839_v1 }
 0x311   : > { %v1326_v57 = vsel %vm1325_vm6, %v1835_v34, %v1322_v50  ;;  %v1211_v18 = vsel %vm2668_vm1, %v1210_v30, %v1206_v16  ;;  %v1364_v15 = vmul.f32 %v1841_v13, %v2658_v47  ;;  %vm1369_vm10 = vweird.f32 %v1841_v13  ;;  %vm1295_vm13 = vmor %vm1293_vm11, %vm1294_vm9 }
 0x312   : > { %v1331_v0 = vsel %vm2672_vm2, %v1330_v9, %v1326_v57  ;;  %v1212_v56 = vmul.f32 %v1211_v18, %v2557_v2  ;;  %v1290_v36 = vsub.f32 1.0, %v1289_v6  ;;  %v1221_v25 = vsel %vm1220_vm8, %v1837_v19, %v1217_v26  ;;  %vm1370_vm14 = vmor %vm1368_vm12, %vm1369_vm10 }
 0x313   : > { %v1332_v42 = vmul.f32 %v1331_v0, %v1015_v7  ;;  %v1365_v28 = vsub.f32 1.0, %v1364_v15  ;;  %v1226_v60 = vsel %vm2680_vm7, %v1225_v5, %v1221_v25  ;;  %v1297_v2 = vand.u32 2147483647, %v2654_v11 }
 0x314   : > { %1410 = vst [vmem:[%s2599_s24 + $0x10] sm:$0xff] %v1212_v56  ;;  %v1291_v37 = vmul.f32 %v1839_v1, %v1290_v36  ;;  %v1227_v31 = vmul.f32 %v1226_v60, %v2566_v17  ;;  %v916_v7 = vmul.f32 0.0, %v2524_v61  ;;  %v1018_v34 = vadd.f32 %v996_v51, %v2650_v48 }
 0x315   : > { %1418 = vst [vmem:[%s2599_s24 + $0x50] sm:$0xff] %v1332_v42  ;;  %v1366_v32 = vmul.f32 %v1841_v13, %v1365_v28  ;;  %vm1298_vm15 = vcmp.eq.f32.partialorder %v1297_v2, 8.507059e+37  ;;  %v923_v20 = vmul.f32 0.0, %v2534_v44  ;;  %v919_v36 = vmul.f32 0.0, %v2540_v59 }
 0x316   : > { %v1292_v12 = vadd.f32 %v1839_v1, %v1291_v37  ;;  %1411 = vst [vmem:[%s2599_s24 + $0x18] sm:$0xff] %v1227_v31  ;;  %v1013_v17 = vadd.f32 %v2590_v3, %v916_v7  ;;  %v2710_v3 = vpop.f32.mrf.mxu3 }
 0x317   : > { %v1367_v23 = vadd.f32 %v1841_v13, %v1366_v32  ;;  %v1016_v46 = vadd.f32 %v2618_v29, %v919_v36  ;;  %v922_v29 = vmul.f32 0.0, %v2518_v55 }
 0x318   : > { %v1296_v53 = vsel %vm1295_vm13, %v1839_v1, %v1292_v12  ;;  %v1136_v61 = vpop.permute.xlu0 %1135 }
 0x319   : > { %v1371_v27 = vsel %vm1370_vm14, %v1841_v13, %v1367_v23  ;;  %v1301_v11 = vsel %vm1298_vm15, %v1300_v39, %v1296_v53  ;;  %1842 = vrcp.f32 %v1136_v61  ;;  %v1314_v8 = vand.u32 2147483648, %v1136_v61 }
 0x31a   : > { %v1376_v48 = vsel %vm1373_vm0, %v1375_v33, %v1371_v27  ;;  %v1302_v45 = vmul.f32 %v1301_v11, %v1013_v17  ;;  %v1312_v52 = vand.u32 2147483647, %v1136_v61  ;;  %vm1308_vm2 = vweird.f32 %v1136_v61 }
 0x31b   : > { %v1377_v19 = vmul.f32 %v1376_v48, %v1018_v34  ;;  %v1315_v63 = vor.u32 1.1754944e-38, %v1314_v8  ;;  %v1019_v34 = vadd.f32 %v2710_v3, %v922_v29 }
 0x31c   : > { %1416 = vst [vmem:[%s2599_s24 + $0x40] sm:$0xff] %v1302_v45  ;;  %vm1313_vm4 = vcmp.eq.f32.partialorder %v1312_v52, 8.507059e+37 }
 0x31d   : > { %1421 = vst [vmem:[%s2599_s24 + $0x68] sm:$0xff] %v1377_v19 }
 0x31e   : > { %v1002_v30 = vpop.f32.mrf.mxu3 }
 0x31f   : > { %v1843_v47 = vpop.eup %1842  ;;  %v1020_v62 = vadd.f32 %v1002_v30, %v923_v20 }
 0x320   : > { %v1304_v54 = vmul.f32 %v1843_v47, %v1136_v61  ;;  %v1166_v24 = vpop.permute.xlu0 %1165  ;;  %vm1309_vm1 = vweird.f32 %v1843_v47 }
 0x321   : > { %1844 = vrcp.f32 %v1166_v24  ;;  %vm1310_vm3 = vmor %vm1308_vm2, %vm1309_vm1  ;;  %v1404_v58 = vand.u32 2147483648, %v1166_v24  ;;  %v1402_v50 = vand.u32 2147483647, %v1166_v24  ;;  %vm1398_vm6 = vweird.f32 %v1166_v24 }
 0x322   : > { %v1305_v22 = vsub.f32 1.0, %v1304_v54 }
 0x323   : > { %v1405_v16 = vor.u32 1.1754944e-38, %v1404_v58  ;;  %vm1403_vm8 = vcmp.eq.f32.partialorder %v1402_v50, 8.507059e+37 }
 0x324   : > { %v1306_v4 = vmul.f32 %v1843_v47, %v1305_v22 }
 0x326   : > { %v1307_v41 = vadd.f32 %v1843_v47, %v1306_v4 }
 0x327   : > { %v1845_v49 = vpop.eup %1844 }
 0x328   : > { %v1311_v40 = vsel %vm1310_vm3, %v1843_v47, %v1307_v41  ;;  %v1394_v21 = vmul.f32 %v1845_v49, %v1166_v24  ;;  %vm1399_vm5 = vweird.f32 %v1845_v49 }
 0x329   : > { %v1316_v43 = vsel %vm1313_vm4, %v1315_v63, %v1311_v40  ;;  %vm1400_vm7 = vmor %vm1398_vm6, %vm1399_vm5 }
 0x32a   : > { %v1317_v14 = vmul.f32 %v1316_v43, %v2593_v35  ;;  %v1395_v9 = vsub.f32 1.0, %v1394_v21 }
 0x32c   : > { %1417 = vst [vmem:[%s2599_s24 + $0x48] sm:$0xff] %v1317_v14  ;;  %v1396_v1 = vmul.f32 %v1845_v49, %v1395_v9 }
 0x32e   : > { %v1397_v13 = vadd.f32 %v1845_v49, %v1396_v1 }
 0x330   : > { %v1401_v5 = vsel %vm1400_vm7, %v1845_v49, %v1397_v13 }
 0x331   : > { %v1406_v6 = vsel %vm1403_vm8, %v1405_v16, %v1401_v5 }
 0x332   : > { %v1407_v57 = vmul.f32 %v1406_v6, %v1020_v62 }
 0x334   : > { %1423 = vst [vmem:[%s2599_s24 + $0x78] sm:$0xff] %v1407_v57 }
 0x33a   : > { %v1146_v35 = vpop.permute.xlu1 %1145 }
 0x33b   : > { %1846 = vrcp.f32 %v1146_v35  ;;  %v1344_v56 = vand.u32 2147483648, %v1146_v35  ;;  %v1342_v10 = vand.u32 2147483647, %v1146_v35  ;;  %vm1338_vm10 = vweird.f32 %v1146_v35 }
 0x33d   : > { %v1345_v28 = vor.u32 1.1754944e-38, %v1344_v56  ;;  %vm1343_vm12 = vcmp.eq.f32.partialorder %v1342_v10, 8.507059e+37 }
 0x341   : > { %v1847_v18 = vpop.eup %1846 }
 0x342   : > { %v1334_v26 = vmul.f32 %v1847_v18, %v1146_v35  ;;  %v1161_v15 = vpop.permute.xlu1 %1160  ;;  %vm1339_vm9 = vweird.f32 %v1847_v18 }
 0x343   : > { %1848 = vrcp.f32 %v1161_v15  ;;  %vm1340_vm11 = vmor %vm1338_vm10, %vm1339_vm9  ;;  %v1389_v32 = vand.u32 2147483648, %v1161_v15  ;;  %v1387_v38 = vand.u32 2147483647, %v1161_v15  ;;  %vm1383_vm14 = vweird.f32 %v1161_v15 }
 0x344   : > { %v1335_v0 = vsub.f32 1.0, %v1334_v26 }
 0x345   : > { %v1390_v12 = vor.u32 1.1754944e-38, %v1389_v32  ;;  %vm1388_vm0 = vcmp.eq.f32.partialorder %v1387_v38, 8.507059e+37 }
 0x346   : > { %v1336_v44 = vmul.f32 %v1847_v18, %v1335_v0 }
 0x348   : > { %v1337_v42 = vadd.f32 %v1847_v18, %v1336_v44 }
 0x349   : > { %v1849_v25 = vpop.eup %1848 }
 0x34a   : > { %v1341_v51 = vsel %vm1340_vm11, %v1847_v18, %v1337_v42  ;;  %v1379_v60 = vmul.f32 %v1849_v25, %v1161_v15  ;;  %vm1384_vm13 = vweird.f32 %v1849_v25 }
 0x34b   : > { %v1346_v37 = vsel %vm1343_vm12, %v1345_v28, %v1341_v51  ;;  %vm1385_vm15 = vmor %vm1383_vm14, %vm1384_vm13 }
 0x34c   : > { %v1347_v2 = vmul.f32 %v1346_v37, %v1016_v46  ;;  %v1380_v31 = vsub.f32 1.0, %v1379_v60 }
 0x34e   : > { %1419 = vst [vmem:[%s2599_s24 + $0x58] sm:$0xff] %v1347_v2  ;;  %v1381_v59 = vmul.f32 %v1849_v25, %v1380_v31 }
 0x350   : > { %v1382_v7 = vadd.f32 %v1849_v25, %v1381_v59 }
 0x352   : > { %v1386_v23 = vsel %vm1385_vm15, %v1849_v25, %v1382_v7 }
 0x353   : > { %v1391_v39 = vsel %vm1388_vm0, %v1390_v12, %v1386_v23 }
 0x354   : > { %v1392_v17 = vmul.f32 %v1391_v39, %v1019_v34 }
 0x356   : > { %1422 = vst [vmem:[%s2599_s24 + $0x70] sm:$0xff] %v1392_v17 }
 0x357   : > { %1967 = shalt.err (!%p1964_p13)
}
 0x358   : > { %s2033_s11 = smov 128   ;;  %s2034_s1 = smov 8  }
 0x359   : > { %1678 = dma.vmem_to_hbm [thread:$0]  (%p2110_p9), %s1440_s21, 2048, %s1442_s15, %s1425_s22, %s2033_s11, %s2033_s11, %s2034_s1  }
 0x35a PF: > { %s2789_s20 = sld [smem:[#allocation17_spill]]  ;;  %s1456_s28 = sand.u32 1, %s2006_s12  }
 0x35b   : > { %p1691_p0 = pnand %p1584_p12, %p2117_p11  ;;  %s1457_s16 = scalar_lea.sflag [#allocation7], %s1456_s28 }
 0x35d   : > { %p1692_p1 = pneg %p1691_p0 }
 0x35f   : > { %2001 = dma.done.wait (%p1692_p1), %s1457_s16, 2048  }
 0x360   : > { %2003 = vsyncadd (%p1692_p1), %s1457_s16, 4294965248  ;;  %s22_s17 = sadd.s32 1, %s2789_s20   ;;  %s2790_s14 = sld [smem:[#allocation15_spill]] }
 0x361   : > { %p19_p2 = scmp.ge.s32.totalorder %s22_s17, 4   ;;  %s2791_s26 = sld [smem:[#allocation19_spill]] }
 0x362   : > { %s2792_s15 = sld [smem:[#allocation16_spill]]  ;;  %s2794_s12 = smov %s2010_s13 }
 0x363   : > { %s2793_s16 = sld [smem:[#allocation18_spill]]  ;;  %21 = sbr.rel (!%p19_p2) target bundleno = 10 (0xa), region = 109 }
 0x366   : > { %s2795_s13 = smov %s2790_s14 }
 0x367   : > { %s2796_s14 = smov %s2791_s26 }
 0x368   :  { %1463 = vsyncpa [#allocation6], 1 }
 0x369   :  { %1465 = vsyncpa [#allocation6 + $0x1], 1 }
 0x36a   :  { %1466 = vsyncpa [#allocation9], 1 }
 0x36b   :  { %1468 = vsyncpa [#allocation9 + $0x1], 1 }
 0x36c   :  { %1469 = vsyncpa [#allocation7], 1 }
 0x36d   :  { %1471 = vsyncpa [#allocation7 + $0x1], 1 }

</bundles_post_ra>
